<compile_context>
chip_gen: v6e
topology: v6e:2x2x1
jax: 0.10.0
libtpu: 0.0.40
codegen_flags: <defaults>
</compile_context>

<pallas_src>
import functools

import numpy as np
import jax
import jax.numpy as jnp
from jax.experimental import pallas as pl
from jax.experimental.pallas import tpu as pltpu

_SQRT_HALF = 0.7071067811865476
_SQRT_2_OVER_PI = 0.7978845608028654


def _gelu(v, approximate=False):
    if approximate:
        # tanh form: routes most of the work to the EUP slot.
        # Numerics differ slightly from nn.GELU(approximate='none') -> off by default.
        return 0.5 * v * (1.0 + jnp.tanh(_SQRT_2_OVER_PI * (v + 0.044715 * v * v * v)))
    # nn.GELU() default (approximate='none'): 0.5*x*(1+erf(x/sqrt(2)))
    return 0.5 * v * (1.0 + jax.lax.erf(v * _SQRT_HALF))


def _bilinear_matrix(in_size, out_size, ratio):
    """PyTorch F.interpolate(mode='bilinear', align_corners=False) as a dense (out,in) matrix."""
    i = np.arange(out_size, dtype=np.float64)
    src = (i + 0.5) / float(ratio) - 0.5
    src = np.maximum(src, 0.0)                       # PyTorch clamps negative source coords
    i0 = np.floor(src).astype(np.int64)
    i0 = np.minimum(i0, in_size - 1)
    i1 = np.minimum(i0 + 1, in_size - 1)
    frac = (src - i0).astype(np.float32)
    mat = np.zeros((out_size, in_size), dtype=np.float32)
    rows = np.arange(out_size)
    mat[rows, i0] += (1.0 - frac)
    mat[rows, i1] += frac
    return mat


def _upconv_kernel(x_ref, k_ref, w1_ref, w3_ref, o_ref, *, wo, approximate_gelu):
    # x_ref : (1, Cin, H*W)   bf16   low-res input, flat spatial (lane-dense)
    # k_ref : (H*W, Ho*Wo)    bf16   fused bilinear-upsample matrix kron(Wh, Ww)^T
    # w1_ref: (Ct, Cin)       bf16   1x1 conv weights (output-channel tile)
    # w3_ref: (Ct, 9)         f32    depthwise 3x3 taps, row-major
    # o_ref : (1, Ct, Ho*Wo)         output, flat spatial (lane-dense)
    ct, howo = o_ref.shape[1], o_ref.shape[2]
    ho = howo // wo

    # ---- 1x1 conv on the LOW-RES grid (commutes exactly with the bilinear upsample) ----
    y = jnp.dot(w1_ref[...], x_ref[0], preferred_element_type=jnp.float32)    # (Ct, H*W)

    # ---- fused bilinear upsample: one MXU matmul, zero relayouts ----
    up = jnp.dot(y.astype(jnp.bfloat16), k_ref[...],
                 preferred_element_type=jnp.float32)                          # (Ct, Ho*Wo)
    a = _gelu(up, approximate_gelu)                                           # GELU #1, f32

    # ---- depthwise 3x3, padding=1, on the flat layout: pltpu.roll + border masks ----
    p = jax.lax.broadcasted_iota(jnp.int32, (1, howo), 1)
    col = p % wo
    up_ok = p >= wo                  # output row i >= 1     (needed when di = -1)
    dn_ok = p < (ho - 1) * wo        # output row i <= Ho-2  (needed when di = +1)
    lf_ok = col != 0                 # output col j >= 1     (needed when dj = -1)
    rt_ok = col != wo - 1            # output col j <= Wo-2  (needed when dj = +1)

    w3 = w3_ref[...]                                                          # (Ct, 9)
    acc = jnp.zeros_like(a)
    for di in (-1, 0, 1):
        row_ok = up_ok if di == -1 else (dn_ok if di == 1 else None)
        for dj in (-1, 0, 1):
            col_ok = lf_ok if dj == -1 else (rt_ok if dj == 1 else None)
            mask = row_ok
            if col_ok is not None:
                mask = col_ok if mask is None else jnp.logical_and(mask, col_ok)
            shift = (-(di * wo + dj)) % howo       # shifted[p] = a[p + di*Wo + dj]
            sh = a if shift == 0 else pltpu.roll(a, shift=shift, axis=1)
            if mask is not None:
                sh = jnp.where(mask, sh, 0.0)      # zero padding at the image border
            tap = w3[:, (di + 1) * 3 + (dj + 1)].reshape(ct, 1)
            acc = acc + tap * sh

    o_ref[0] = _gelu(acc, approximate_gelu).astype(o_ref.dtype)               # GELU #2


def _vmem_limit_bytes():
    """Per-generation VMEM limit: ~96 MiB on 128-MiB chips (v5e/v6e), ~48 MiB on v7x."""
    cap = 64 * 1024 * 1024
    try:
        cap = int(pltpu.get_tpu_info().vmem_capacity_bytes)
    except Exception:
        pass
    return min(cap * 3 // 4, 100 * 1024 * 1024)


def _pick_c_tile(cout, cin, hw, howo, out_itemsize, vmem_budget_bytes):
    """Largest MXU-friendly output-channel tile that divides Cout and fits the budget."""
    cands = sorted({c for c in (256, 128, 64, 32, 16, 8) if c < cout and cout % c == 0}
                   | {cout}, reverse=True)
    fixed = 2 * (cin * hw * 2 + hw * howo * 2)            # x + kron blocks (double-buffered)
    for c in cands:
        per_c = 2 * (cin * 2 + 9 * 4 + howo * out_itemsize) + 6 * howo * 4
        if fixed + c * per_c <= vmem_budget_bytes:
            return c
    return cands[-1]


def upconv_forward(x, w_conv1x1, w_conv3x3, ratio=2, approximate_gelu=False):
    """x: (N, Cin, H, W); w_conv1x1: (Cout, Cin, 1, 1); w_conv3x3: (Cout, 1, 3, 3)."""
    N, Cin, H, W = x.shape
    Cout = w_conv1x1.shape[0]
    Ho, Wo = H * ratio, W * ratio
    HW, HoWo = H * W, Ho * Wo

    # Fused bilinear matrix (PyTorch align_corners=False). For ratio=2 all entries are
    # small dyadic rationals -> exact in bf16.
    wh = _bilinear_matrix(H, Ho, ratio)                                # (Ho, H)
    ww = _bilinear_matrix(W, Wo, ratio)                                # (Wo, W)
    kron = jnp.asarray(np.kron(wh, ww).T).astype(jnp.bfloat16)         # (H*W, Ho*Wo)

    # bf16 matmul operands prepared in the wrapper (halves the input HBM->VMEM DMA).
    x_flat = x.reshape(N, Cin, HW).astype(jnp.bfloat16)
    w1 = w_conv1x1.reshape(Cout, Cin).astype(jnp.bfloat16)
    w3 = w_conv3x3.reshape(Cout, 9).astype(jnp.float32)

    vmem_limit = _vmem_limit_bytes()
    c_tile = _pick_c_tile(Cout, Cin, HW, HoWo, jnp.dtype(x.dtype).itemsize,
                          int(vmem_limit * 0.6))
    n_ct = Cout // c_tile

    kernel = functools.partial(_upconv_kernel, wo=Wo, approximate_gelu=approximate_gelu)

    out_flat = pl.pallas_call(
        kernel,
        out_shape=jax.ShapeDtypeStruct((N, Cout, HoWo), x.dtype),
        grid=(N, n_ct),
        in_specs=[
            pl.BlockSpec((1, Cin, HW), lambda n, c: (n, 0, 0)),
            pl.BlockSpec((HW, HoWo), lambda n, c: (0, 0)),
            pl.BlockSpec((c_tile, Cin), lambda n, c: (c, 0)),
            pl.BlockSpec((c_tile, 9), lambda n, c: (c, 0)),
        ],
        out_specs=pl.BlockSpec((1, c_tile, HoWo), lambda n, c: (n, c, 0)),
        compiler_params=pltpu.CompilerParams(
            dimension_semantics=("parallel", "parallel"),
            vmem_limit_bytes=vmem_limit,
        ),
    )(x_flat, kron, w1, w3)
    return out_flat.reshape(N, Cout, Ho, Wo)       # contiguous -> free reshape in XLA


def upconv_reference(x, w_conv1x1, w_conv3x3, ratio=2):
    """Pure-JAX f32 reference following the original PyTorch op order."""
    N, Cin, H, W = x.shape
    Cout = w_conv1x1.shape[0]
    Ho, Wo = H * ratio, W * ratio
    wh = jnp.asarray(_bilinear_matrix(H, Ho, ratio))
    ww = jnp.asarray(_bilinear_matrix(W, Wo, ratio))
    up = jnp.einsum('oh,nchw,pw->ncop', wh, x.astype(jnp.float32), ww)
    y = jnp.einsum('kc,ncij->nkij', w_conv1x1.reshape(Cout, Cin).astype(jnp.float32), up)
    y = _gelu(y)
    yp = jnp.pad(y, ((0, 0), (0, 0), (1, 1), (1, 1)))
    w3 = w_conv3x3.reshape(Cout, 3, 3).astype(jnp.float32)
    out = jnp.zeros_like(y)
    for di in range(3):
        for dj in range(3):
            out = out + w3[None, :, di, dj, None, None] * yp[:, :, di:di + Ho, dj:dj + Wo]
    return _gelu(out)


if __name__ == "__main__":
    key = jax.random.PRNGKey(0)
    kx, k1, k3 = jax.random.split(key, 3)

    N, Cin, H, W = 2, 4, 16, 16
    Cout, ratio = 8, 2

    x = jax.random.normal(kx, (N, Cin, H, W), jnp.float32)
    # deterministic synthetic weights (shapes match nn.Conv2d(...).weight)
    w_conv1x1 = jax.random.normal(k1, (Cout, Cin, 1, 1), jnp.float32) / jnp.sqrt(Cin)
    w_conv3x3 = jax.random.normal(k3, (Cout, 1, 3, 3), jnp.float32) / 3.0

    out = jax.block_until_ready(upconv_forward(x, w_conv1x1, w_conv3x3, ratio=ratio))
    assert out.shape == (N, Cout, H * ratio, W * ratio)

    # Tolerance covers bf16 matmul operands (f32 accumulation) vs. a full-f32 reference
    # in the original PyTorch op order; tightened from the previous 1e-1.
    ref = jax.block_until_ready(upconv_reference(x, w_conv1x1, w_conv3x3, ratio=ratio))
    np.testing.assert_allclose(np.asarray(out), np.asarray(ref), rtol=5e-2, atol=5e-2)

    print("KERNEL_OK")
</pallas_src>

<mosaic_0001>
module attributes {stable_mosaic.version = 11 : i64} {
  func.func @_upconv_kernel(%arg0: i32, %arg1: i32, %arg2: memref<1x4x256xbf16, #tpu.memory_space<vmem>>, %arg3: memref<256x1024xbf16, #tpu.memory_space<vmem>>, %arg4: memref<8x4xbf16, #tpu.memory_space<vmem>>, %arg5: memref<8x9xf32, #tpu.memory_space<vmem>>, %arg6: memref<1x8x1024xf32, #tpu.memory_space<vmem>>) attributes {dimension_semantics = [#tpu.dimension_semantics<parallel>, #tpu.dimension_semantics<parallel>], iteration_bounds = array<i64: 2, 1>, scalar_prefetch = 0 : i64, scratch_operands = 0 : i64, tpu.core_type = #tpu.core_type<tc>, window_params = [{transform_indices = @transform_0, window_bounds = array<i64: 1, 4, 256>}, {pipeline_mode = #tpu.pipeline_mode<synchronous>, transform_indices = @transform_1, window_bounds = array<i64: 256, 1024>}, {transform_indices = @transform_2, window_bounds = array<i64: 8, 4>}, {transform_indices = @transform_3, window_bounds = array<i64: 8, 9>}, {transform_indices = @transform_4, window_bounds = array<i64: 1, 8, 1024>}]} {
    %c0 = arith.constant 0 : index
    %c0_0 = arith.constant 0 : index
    %0 = vector.load %arg4[%c0, %c0_0] : memref<8x4xbf16, #tpu.memory_space<vmem>>, vector<8x4xbf16>
    %c0_1 = arith.constant 0 : index
    %c0_2 = arith.constant 0 : index
    %c0_3 = arith.constant 0 : index
    %1 = vector.load %arg2[%c0_1, %c0_2, %c0_3] : memref<1x4x256xbf16, #tpu.memory_space<vmem>>, vector<1x4x256xbf16>
    %2 = vector.shape_cast %1 : vector<1x4x256xbf16> to vector<4x256xbf16>
    %cst = arith.constant dense<0.000000e+00> : vector<8x256xf32>
    %3 = tpu.matmul %0, %2, %cst {dimension_numbers = #tpu.dot_dimension_numbers<[1], [0], [0], [1], [0, 0, 1, 1], [], []>} : vector<8x4xbf16>, vector<4x256xbf16>, vector<8x256xf32> -> vector<8x256xf32>
    %4 = arith.truncf %3 : vector<8x256xf32> to vector<8x256xbf16>
    %c0_4 = arith.constant 0 : index
    %c0_5 = arith.constant 0 : index
    %5 = vector.load %arg3[%c0_4, %c0_5] : memref<256x1024xbf16, #tpu.memory_space<vmem>>, vector<256x1024xbf16>
    %cst_6 = arith.constant dense<0.000000e+00> : vector<8x1024xf32>
    %6 = tpu.matmul %4, %5, %cst_6 {dimension_numbers = #tpu.dot_dimension_numbers<[1], [0], [0], [1], [0, 0, 1, 1], [], []>} : vector<8x256xbf16>, vector<256x1024xbf16>, vector<8x1024xf32> -> vector<8x1024xf32>
    %cst_7 = arith.constant 5.000000e-01 : f32
    %7 = vector.broadcast %cst_7 : f32 to vector<8x1024xf32>
    %8 = arith.mulf %7, %6 : vector<8x1024xf32>
    %cst_8 = arith.constant 0.707106769 : f32
    %9 = vector.broadcast %cst_8 : f32 to vector<8x1024xf32>
    %10 = arith.mulf %6, %9 : vector<8x1024xf32>
    %11 = math.erf %10 : vector<8x1024xf32>
    %cst_9 = arith.constant 1.000000e+00 : f32
    %12 = vector.broadcast %cst_9 : f32 to vector<8x1024xf32>
    %13 = arith.addf %12, %11 : vector<8x1024xf32>
    %14 = arith.mulf %8, %13 : vector<8x1024xf32>
    %15 = tpu.iota {dimensions = array<i32: 1>} : vector<1x1024xi32>
    %c32_i32 = arith.constant 32 : i32
    %c0_i32 = arith.constant 0 : i32
    %16 = arith.cmpi eq, %c32_i32, %c0_i32 : i32
    %c1_i32 = arith.constant 1 : i32
    %17 = arith.select %16, %c1_i32, %c32_i32 : i32
    %18 = vector.broadcast %17 : i32 to vector<1x1024xi32>
    %19 = arith.remsi %15, %18 : vector<1x1024xi32>
    %c0_i32_10 = arith.constant 0 : i32
    %20 = vector.broadcast %c0_i32_10 : i32 to vector<1x1024xi32>
    %21 = arith.cmpi ne, %19, %20 : vector<1x1024xi32>
    %c0_i32_11 = arith.constant 0 : i32
    %22 = vector.broadcast %c0_i32_11 : i32 to vector<1x1024xi32>
    %23 = arith.cmpi slt, %19, %22 : vector<1x1024xi32>
    %c0_i32_12 = arith.constant 0 : i32
    %24 = arith.cmpi slt, %17, %c0_i32_12 : i32
    %25 = vector.broadcast %24 : i1 to vector<1x1024xi1>
    %26 = vector.broadcast %25 : vector<1x1024xi1> to vector<1x1024xi1>
    %27 = arith.xori %23, %26 : vector<1x1024xi1>
    %28 = arith.andi %27, %21 : vector<1x1024xi1>
    %29 = vector.broadcast %17 : i32 to vector<1x1024xi32>
    %30 = arith.addi %19, %29 : vector<1x1024xi32>
    %31 = arith.select %28, %30, %19 : vector<1x1024xi1>, vector<1x1024xi32>
    %c32_i32_13 = arith.constant 32 : i32
    %32 = vector.broadcast %c32_i32_13 : i32 to vector<1x1024xi32>
    %33 = arith.cmpi sge, %15, %32 : vector<1x1024xi32>
    %c992_i32 = arith.constant 992 : i32
    %34 = vector.broadcast %c992_i32 : i32 to vector<1x1024xi32>
    %35 = arith.cmpi slt, %15, %34 : vector<1x1024xi32>
    %c0_i32_14 = arith.constant 0 : i32
    %36 = vector.broadcast %c0_i32_14 : i32 to vector<1x1024xi32>
    %37 = arith.cmpi ne, %31, %36 : vector<1x1024xi32>
    %c31_i32 = arith.constant 31 : i32
    %38 = vector.broadcast %c31_i32 : i32 to vector<1x1024xi32>
    %39 = arith.cmpi ne, %31, %38 : vector<1x1024xi32>
    %c0_15 = arith.constant 0 : index
    %c0_16 = arith.constant 0 : index
    %40 = vector.load %arg5[%c0_15, %c0_16] : memref<8x9xf32, #tpu.memory_space<vmem>>, vector<8x9xf32>
    %cst_17 = arith.constant 0.000000e+00 : f32
    %41 = vector.broadcast %cst_17 : f32 to vector<8x1024xf32>
    %42 = arith.andi %33, %37 : vector<1x1024xi1>
    %c33_i32 = arith.constant 33 : i32
    %43 = tpu.dynamic_rotate %14 by %c33_i32 dim 1 : vector<8x1024xf32>, i32 -> vector<8x1024xf32>
    %cst_18 = arith.constant 0.000000e+00 : f32
    %44 = vector.shape_cast %42 : vector<1x1024xi1> to vector<1x1024xi1>
    %45 = vector.broadcast %44 : vector<1x1024xi1> to vector<8x1024xi1>
    %46 = vector.broadcast %cst_18 : f32 to vector<8x1024xf32>
    %47 = arith.select %45, %43, %46 : vector<8x1024xi1>, vector<8x1024xf32>
    %48 = vector.extract_strided_slice %40 {offsets = [0, 0], sizes = [8, 1], strides = [1, 1]} : vector<8x9xf32> to vector<8x1xf32>
    %49 = vector.shape_cast %48 : vector<8x1xf32> to vector<8xf32>
    %50 = vector.shape_cast %49 : vector<8xf32> to vector<8x1xf32>
    %51 = vector.broadcast %50 : vector<8x1xf32> to vector<8x1024xf32>
    %52 = arith.mulf %51, %47 : vector<8x1024xf32>
    %53 = arith.addf %41, %52 : vector<8x1024xf32>
    %c32_i32_19 = arith.constant 32 : i32
    %54 = tpu.dynamic_rotate %14 by %c32_i32_19 dim 1 : vector<8x1024xf32>, i32 -> vector<8x1024xf32>
    %cst_20 = arith.constant 0.000000e+00 : f32
    %55 = vector.shape_cast %33 : vector<1x1024xi1> to vector<1x1024xi1>
    %56 = vector.broadcast %55 : vector<1x1024xi1> to vector<8x1024xi1>
    %57 = vector.broadcast %cst_20 : f32 to vector<8x1024xf32>
    %58 = arith.select %56, %54, %57 : vector<8x1024xi1>, vector<8x1024xf32>
    %59 = vector.extract_strided_slice %40 {offsets = [0, 1], sizes = [8, 1], strides = [1, 1]} : vector<8x9xf32> to vector<8x1xf32>
    %60 = vector.shape_cast %59 : vector<8x1xf32> to vector<8xf32>
    %61 = vector.shape_cast %60 : vector<8xf32> to vector<8x1xf32>
    %62 = vector.broadcast %61 : vector<8x1xf32> to vector<8x1024xf32>
    %63 = arith.mulf %62, %58 : vector<8x1024xf32>
    %64 = arith.addf %53, %63 : vector<8x1024xf32>
    %65 = arith.andi %33, %39 : vector<1x1024xi1>
    %c31_i32_21 = arith.constant 31 : i32
    %66 = tpu.dynamic_rotate %14 by %c31_i32_21 dim 1 : vector<8x1024xf32>, i32 -> vector<8x1024xf32>
    %cst_22 = arith.constant 0.000000e+00 : f32
    %67 = vector.shape_cast %65 : vector<1x1024xi1> to vector<1x1024xi1>
    %68 = vector.broadcast %67 : vector<1x1024xi1> to vector<8x1024xi1>
    %69 = vector.broadcast %cst_22 : f32 to vector<8x1024xf32>
    %70 = arith.select %68, %66, %69 : vector<8x1024xi1>, vector<8x1024xf32>
    %71 = vector.extract_strided_slice %40 {offsets = [0, 2], sizes = [8, 1], strides = [1, 1]} : vector<8x9xf32> to vector<8x1xf32>
    %72 = vector.shape_cast %71 : vector<8x1xf32> to vector<8xf32>
    %73 = vector.shape_cast %72 : vector<8xf32> to vector<8x1xf32>
    %74 = vector.broadcast %73 : vector<8x1xf32> to vector<8x1024xf32>
    %75 = arith.mulf %74, %70 : vector<8x1024xf32>
    %76 = arith.addf %64, %75 : vector<8x1024xf32>
    %c1_i32_23 = arith.constant 1 : i32
    %77 = tpu.dynamic_rotate %14 by %c1_i32_23 dim 1 : vector<8x1024xf32>, i32 -> vector<8x1024xf32>
    %cst_24 = arith.constant 0.000000e+00 : f32
    %78 = vector.shape_cast %37 : vector<1x1024xi1> to vector<1x1024xi1>
    %79 = vector.broadcast %78 : vector<1x1024xi1> to vector<8x1024xi1>
    %80 = vector.broadcast %cst_24 : f32 to vector<8x1024xf32>
    %81 = arith.select %79, %77, %80 : vector<8x1024xi1>, vector<8x1024xf32>
    %82 = vector.extract_strided_slice %40 {offsets = [0, 3], sizes = [8, 1], strides = [1, 1]} : vector<8x9xf32> to vector<8x1xf32>
    %83 = vector.shape_cast %82 : vector<8x1xf32> to vector<8xf32>
    %84 = vector.shape_cast %83 : vector<8xf32> to vector<8x1xf32>
    %85 = vector.broadcast %84 : vector<8x1xf32> to vector<8x1024xf32>
    %86 = arith.mulf %85, %81 : vector<8x1024xf32>
    %87 = arith.addf %76, %86 : vector<8x1024xf32>
    %88 = vector.extract_strided_slice %40 {offsets = [0, 4], sizes = [8, 1], strides = [1, 1]} : vector<8x9xf32> to vector<8x1xf32>
    %89 = vector.shape_cast %88 : vector<8x1xf32> to vector<8xf32>
    %90 = vector.shape_cast %89 : vector<8xf32> to vector<8x1xf32>
    %91 = vector.broadcast %90 : vector<8x1xf32> to vector<8x1024xf32>
    %92 = arith.mulf %91, %14 : vector<8x1024xf32>
    %93 = arith.addf %87, %92 : vector<8x1024xf32>
    %c1023_i32 = arith.constant 1023 : i32
    %94 = tpu.dynamic_rotate %14 by %c1023_i32 dim 1 : vector<8x1024xf32>, i32 -> vector<8x1024xf32>
    %cst_25 = arith.constant 0.000000e+00 : f32
    %95 = vector.shape_cast %39 : vector<1x1024xi1> to vector<1x1024xi1>
    %96 = vector.broadcast %95 : vector<1x1024xi1> to vector<8x1024xi1>
    %97 = vector.broadcast %cst_25 : f32 to vector<8x1024xf32>
    %98 = arith.select %96, %94, %97 : vector<8x1024xi1>, vector<8x1024xf32>
    %99 = vector.extract_strided_slice %40 {offsets = [0, 5], sizes = [8, 1], strides = [1, 1]} : vector<8x9xf32> to vector<8x1xf32>
    %100 = vector.shape_cast %99 : vector<8x1xf32> to vector<8xf32>
    %101 = vector.shape_cast %100 : vector<8xf32> to vector<8x1xf32>
    %102 = vector.broadcast %101 : vector<8x1xf32> to vector<8x1024xf32>
    %103 = arith.mulf %102, %98 : vector<8x1024xf32>
    %104 = arith.addf %93, %103 : vector<8x1024xf32>
    %105 = arith.andi %35, %37 : vector<1x1024xi1>
    %c993_i32 = arith.constant 993 : i32
    %106 = tpu.dynamic_rotate %14 by %c993_i32 dim 1 : vector<8x1024xf32>, i32 -> vector<8x1024xf32>
    %cst_26 = arith.constant 0.000000e+00 : f32
    %107 = vector.shape_cast %105 : vector<1x1024xi1> to vector<1x1024xi1>
    %108 = vector.broadcast %107 : vector<1x1024xi1> to vector<8x1024xi1>
    %109 = vector.broadcast %cst_26 : f32 to vector<8x1024xf32>
    %110 = arith.select %108, %106, %109 : vector<8x1024xi1>, vector<8x1024xf32>
    %111 = vector.extract_strided_slice %40 {offsets = [0, 6], sizes = [8, 1], strides = [1, 1]} : vector<8x9xf32> to vector<8x1xf32>
    %112 = vector.shape_cast %111 : vector<8x1xf32> to vector<8xf32>
    %113 = vector.shape_cast %112 : vector<8xf32> to vector<8x1xf32>
    %114 = vector.broadcast %113 : vector<8x1xf32> to vector<8x1024xf32>
    %115 = arith.mulf %114, %110 : vector<8x1024xf32>
    %116 = arith.addf %104, %115 : vector<8x1024xf32>
    %c992_i32_27 = arith.constant 992 : i32
    %117 = tpu.dynamic_rotate %14 by %c992_i32_27 dim 1 : vector<8x1024xf32>, i32 -> vector<8x1024xf32>
    %cst_28 = arith.constant 0.000000e+00 : f32
    %118 = vector.shape_cast %35 : vector<1x1024xi1> to vector<1x1024xi1>
    %119 = vector.broadcast %118 : vector<1x1024xi1> to vector<8x1024xi1>
    %120 = vector.broadcast %cst_28 : f32 to vector<8x1024xf32>
    %121 = arith.select %119, %117, %120 : vector<8x1024xi1>, vector<8x1024xf32>
    %122 = vector.extract_strided_slice %40 {offsets = [0, 7], sizes = [8, 1], strides = [1, 1]} : vector<8x9xf32> to vector<8x1xf32>
    %123 = vector.shape_cast %122 : vector<8x1xf32> to vector<8xf32>
    %124 = vector.shape_cast %123 : vector<8xf32> to vector<8x1xf32>
    %125 = vector.broadcast %124 : vector<8x1xf32> to vector<8x1024xf32>
    %126 = arith.mulf %125, %121 : vector<8x1024xf32>
    %127 = arith.addf %116, %126 : vector<8x1024xf32>
    %128 = arith.andi %35, %39 : vector<1x1024xi1>
    %c991_i32 = arith.constant 991 : i32
    %129 = tpu.dynamic_rotate %14 by %c991_i32 dim 1 : vector<8x1024xf32>, i32 -> vector<8x1024xf32>
    %cst_29 = arith.constant 0.000000e+00 : f32
    %130 = vector.shape_cast %128 : vector<1x1024xi1> to vector<1x1024xi1>
    %131 = vector.broadcast %130 : vector<1x1024xi1> to vector<8x1024xi1>
    %132 = vector.broadcast %cst_29 : f32 to vector<8x1024xf32>
    %133 = arith.select %131, %129, %132 : vector<8x1024xi1>, vector<8x1024xf32>
    %134 = vector.extract_strided_slice %40 {offsets = [0, 8], sizes = [8, 1], strides = [1, 1]} : vector<8x9xf32> to vector<8x1xf32>
    %135 = vector.shape_cast %134 : vector<8x1xf32> to vector<8xf32>
    %136 = vector.shape_cast %135 : vector<8xf32> to vector<8x1xf32>
    %137 = vector.broadcast %136 : vector<8x1xf32> to vector<8x1024xf32>
    %138 = arith.mulf %137, %133 : vector<8x1024xf32>
    %139 = arith.addf %127, %138 : vector<8x1024xf32>
    %cst_30 = arith.constant 5.000000e-01 : f32
    %140 = vector.broadcast %cst_30 : f32 to vector<8x1024xf32>
    %141 = arith.mulf %140, %139 : vector<8x1024xf32>
    %cst_31 = arith.constant 0.707106769 : f32
    %142 = vector.broadcast %cst_31 : f32 to vector<8x1024xf32>
    %143 = arith.mulf %139, %142 : vector<8x1024xf32>
    %144 = math.erf %143 : vector<8x1024xf32>
    %cst_32 = arith.constant 1.000000e+00 : f32
    %145 = vector.broadcast %cst_32 : f32 to vector<8x1024xf32>
    %146 = arith.addf %145, %144 : vector<8x1024xf32>
    %147 = arith.mulf %141, %146 : vector<8x1024xf32>
    %c0_33 = arith.constant 0 : index
    %c0_34 = arith.constant 0 : index
    %c0_35 = arith.constant 0 : index
    %148 = vector.load %arg6[%c0_33, %c0_34, %c0_35] : memref<1x8x1024xf32, #tpu.memory_space<vmem>>, vector<1x8x1024xf32>
    %149 = vector.shape_cast %148 : vector<1x8x1024xf32> to vector<8x1024xf32>
    %150 = vector.shape_cast %147 : vector<8x1024xf32> to vector<1x8x1024xf32>
    tpu.vector_store %arg6[%c0_33, %c0_34, %c0_35], %150 {strides = array<i32>} : memref<1x8x1024xf32, #tpu.memory_space<vmem>>, vector<1x8x1024xf32>,
    return
  }
  func.func @transform_0(%arg0: i32, %arg1: i32) -> (i32, i32, i32) {
    %c0_i32 = arith.constant 0 : i32
    %c0_i32_0 = arith.constant 0 : i32
    %c0_i32_1 = arith.constant 0 : i32
    return %arg0, %c0_i32, %c0_i32_0 : i32, i32, i32
  }
  func.func @transform_1(%arg0: i32, %arg1: i32) -> (i32, i32) {
    %c0_i32 = arith.constant 0 : i32
    %c0_i32_0 = arith.constant 0 : i32
    %c0_i32_1 = arith.constant 0 : i32
    return %c0_i32, %c0_i32_0 : i32, i32
  }
  func.func @transform_2(%arg0: i32, %arg1: i32) -> (i32, i32) {
    %c0_i32 = arith.constant 0 : i32
    %c0_i32_0 = arith.constant 0 : i32
    return %arg1, %c0_i32 : i32, i32
  }
  func.func @transform_3(%arg0: i32, %arg1: i32) -> (i32, i32) {
    %c0_i32 = arith.constant 0 : i32
    %c0_i32_0 = arith.constant 0 : i32
    return %arg1, %c0_i32 : i32, i32
  }
  func.func @transform_4(%arg0: i32, %arg1: i32) -> (i32, i32, i32) {
    %c0_i32 = arith.constant 0 : i32
    %c0_i32_0 = arith.constant 0 : i32
    return %arg0, %arg1, %c0_i32 : i32, i32, i32
  }
}

</mosaic_0001>

<bundles_post_ra>
// kernel: tpu_custom_call.1
= control target key start
LH: loop header
LB: loop body
LE: loop exit
PB: predicated region body
PF: predicated region fallthrough
CT: control target
= control target key end

     0   :  { %s3685_s0 = inlined_call_operand.hbm [shape: bf16[2,4,256], index: 0, kind: input, shape index: {}]   ;;  %s3686_s1 = inlined_call_operand.hbm [shape: bf16[256,1024], index: 1, kind: input, shape index: {}]   ;;  %s3687_s2 = inlined_call_operand.vmem [shape: bf16[8,4], index: 2, kind: input, shape index: {}]   ;;  %s3688_s3 = inlined_call_operand.vmem [shape: f32[8,9], index: 3, kind: input, shape index: {}]   ;;  %s3689_s4 = inlined_call_operand.hbm [shape: f32[2,8,1024], index: 4, kind: output, shape index: {}]  }
   0x1   :  { %3702 = sst [smem:[#allocation18_spill]] %s3686_s1 }
   0x2   :  { %9 = vsyncpa [#allocation3], 0 }
   0x3   :  { %11 = vsyncpa [#allocation3 + $0x1], 0 }
   0x4   :  { %12 = vsyncpa [#allocation6], 0 }
   0x5   :  { %13 = vsyncpa [#allocation4], 0 }
   0x6   :  { %15 = vsyncpa [#allocation4 + $0x1], 0  ;;  %s2716_s15 = smov 0   ;;  %s2718_s16 = smov 0  }
   0x7   :  { %s2720_s17 = smov 0   ;;  %s2722_s18 = smov 0  }
   0x8   :  { %s2724_s19 = smov 0   ;;  %s2726_s20 = smov 0  }
   0x9 LB: > { %s2244_s21 = sadd.s32 4294967295, %s2667_s20   ;;  %s2245_s22 = sadd.s32 4294967294, %s2667_s20   ;;  %s2667_s20 = sphi %s2726_s20, %s21_s20   ;;  %s2663_s19 = sphi %s2724_s19, %s3792_s19   ;;  %s2659_s18 = sphi %s2722_s18, %s3791_s18   ;;  %s2655_s17 = sphi %s2720_s17, %s3790_s17   ;;  %s2651_s16 = sphi %s2718_s16, %s3789_s16   ;;  %s2647_s15 = sphi %s2716_s15, %s3788_s15  }
   0xa   : > { %p53_p0 = scmp.ne.s32.totalorder %s2651_s16, %s2647_s15  ;;  %p2750_p1 = scmp.eq.s32.totalorder %s2244_s21, 0 }
   0xb   : > { %p2754_p2 = scmp.eq.s32.totalorder %s2244_s21, 1  ;;  %p158_p3 = scmp.eq.s32.totalorder %s2245_s22, 1 }
   0xc   : > { %p2760_p4 = por %p2750_p1, %p53_p0  ;;  %p2246_p5 = scmp.ge.s32.totalorder %s2667_s20, 1 }
   0xd   : > { %p2765_p6 = por %p158_p3, %p53_p0  ;;  %p165_p7 = scmp.lt.s32.totalorder %s2667_s20, 3 }
   0xe   : > { %s3705_s25 = scalar_select %p2760_p4, 1, 0 }
   0xf   : > { %s3706_s26 = scalar_select %p2765_p6, 1, 0 }
  0x10   : > { %p2770_p8 = pnand %p2246_p5, %p165_p7  ;;  %s2669_s28 = smov [#allocation5]  }
  0x11   : > { %s177_s29 = sshll.u32 %s2669_s28, 4  ;;  %s33_s5 = sadd.s32 1, %s2663_s19  ;;  %s178_s29 = int_to_ptr.vmem [resolvable:$true] %s177_s29 }
  0x12   : > { %p2404_p9 = pneg %p2770_p8  ;;  %s2540_s6 = scalar_lea.vmem %s178_s29, 16384 }
  0x13   : > { %p2541_p13 = scmp.ne.s32.totalorder %s178_s29, %s2540_s6  ;;  %p2548_p5 = scmp.lt.s32.totalorder %s178_s29, %s178_s29 }
  0x14   : > { %p2779_p11 = pnand %p2404_p9, %p2750_p1  ;;  %p2549_p7 = scmp.lt.s32.totalorder %s2540_s6, %s2540_s6 }
  0x16   : > { %p2531_p12 = pneg %p2779_p11  ;;  %p2550_p6 = por %p2549_p7, %p2548_p5 }
  0x18   : > { %p2543_p0 = pnand %p2541_p13, %p2531_p12 }
  0x1a   : > { %p2544_p3 = pneg %p2543_p0 }
  0x1c   : > { %p2551_p4 = pnand %p2550_p6, %p2544_p3 }
  0x1e   : > { %2554 = shalt.err (!%p2551_p4)
}
  0x1f   : > { %s2670_s7 = smov 512   ;;  %s2671_s8 = smov 32  }
  0x20   : > { %s3709_s1 = sld [smem:[#allocation18_spill]]  ;;  %p35_p6 = scmp.ge.s32.totalorder %s33_s5, 2 }
  0x21   : > { %s40_s11 = sadd.s32 1, %s2655_s17  ;;  %p47_p4 = scmp.ne.s32.totalorder %s2655_s17, %s2651_s16 }
  0x22   : > { %p48_p9 = scmp.eq.s32.totalorder %s2667_s20, 0  ;;  %s3794_s5 = smov (%p35_p6, %s33_s5), 0 }
  0x23   : > { %p2803_p13 = por %p2754_p2, %p47_p4  ;;  %s37_s14 = ssub.s32 %s2663_s19, %s3794_s5 }
  0x24   : > { %p2797_p12 = por %p48_p9, %p47_p4  ;;  %p2417_p0 = scmp.lt.s32.totalorder %s2667_s20, 2 }
  0x25   : > { %s205_s21 = sand.u32 1, %s2655_s17  }
  0x26   : > { %2407 = dma.hbm_to_vmem [thread:$0]  (!%p2779_p11), %s3709_s1, 16384, %s178_s29, [#allocation6], %s2670_s7, %s2670_s7, %s2671_s8  }
  0x27   : > { %p38_p11 = scmp.eq.s32.totalorder %s37_s14, 0  ;;  %s2251_s22 = sshll.u32 %s205_s21, 2 }
  0x28   : > { %s2394_s29 = sshll.u32 %s2663_s19, 6  ;;  %s209_s8 = scalar_lea.vmem [#allocation2], %s2251_s22 }
  0x29   : > { %s2812_s28 = scalar_select %p38_p11, %s2655_s17, %s40_s11  }
  0x2a   : > { %s215_s7 = scalar_lea.hbm %s3685_s0, %s2394_s29  ;;  %s217_s9 = sshll.u32 %s209_s8, 4  ;;  %s218_s9 = int_to_ptr.vmem [resolvable:$true] %s217_s9 }
  0x2b   : > { %p2820_p2 = pnand %p2417_p0, %p2797_p12  ;;  %s206_s10 = scalar_lea.sflag [#allocation3], %s205_s21 }
  0x2c   : > { %s2568_s14 = scalar_lea.vmem %s218_s9, 64  ;;  %s2672_s11 = smov [#allocation2]  }
  0x2d   : > { %p2557_p3 = pneg %p2820_p2  ;;  %p2569_p5 = scmp.ne.s32.totalorder %s218_s9, %s2568_s14 }
  0x2e   : > { %s2573_s1 = sshll.u32 %s2672_s11, 4  ;;  %s2574_s1 = int_to_ptr.vmem [resolvable:$false] %s2573_s1 }
  0x2f   : > { %p2571_p7 = pnand %p2569_p5, %p2557_p3  ;;  %s2575_s29 = scalar_lea.vmem %s2574_s1, 128 }
  0x30   : > { %p2576_p4 = scmp.lt.s32.totalorder %s218_s9, %s2574_s1  ;;  %p2577_p9 = scmp.lt.s32.totalorder %s2575_s29, %s2568_s14 }
  0x31   : > { %p2572_p6 = pneg %p2571_p7 }
  0x32   : > { %p2578_p11 = por %p2577_p9, %p2576_p4 }
  0x34   : > { %p2579_p10 = pnand %p2578_p11, %p2572_p6 }
  0x36   : > { %2582 = shalt.err (!%p2579_p10)
}
  0x37   : > { %2411 = dma.hbm_to_vmem [thread:$0]  (!%p2820_p2), %s215_s7, 64, %s218_s9, %s206_s10  }
  0x38   : > { %226 = sbr.rel (%p2770_p8) target bundleno = 790 (0x316), region = 36 }
  0x3d   : > { %s2831_s12 = sand.u32 1, %s2651_s16   ;;  %p3713_p12 = scmp.ne.s32.totalorder %s3705_s25, 0 }
  0x3e   : > { %s2255_s21 = sshll.u32 %s2831_s12, 2  ;;  %s229_s22 = scalar_lea.sflag [#allocation3], %s2831_s12 }
  0x3f   : > { %s232_s30 = scalar_lea.vmem [#allocation2], %s2255_s21 }
  0x40   : > { %2634 = dma.done.wait (%p3713_p12), %s229_s22, 64  }
  0x41   : > { %2636 = vsyncadd (%p3713_p12), %s229_s22, 4294967232 }
  0x42   : > { %2638 = dma.done.wait (%p2750_p1), [#allocation6], 16384  }
  0x43   : > { %2640 = vsyncadd (%p2750_p1), [#allocation6], 4294950912  ;;  %v2673_v0 = vmov 0   ;;  %vm293_vm0 = vcmask 1041408   ;;  %v399_v4 = vld [vmem:[#allocation5 + $0x1c0] sm:$0xff]  ;;  %v400_v6 = vld [vmem:[#allocation5 + $0x1c8] sm:$0xff] }
  0x44   : > { %332 = vmatprep.mubr.bf16.mxu0 %v2673_v0  ;;  %2488 = vset.pattern.permute.xlu0 %v2673_v0  ;;  %v2258_v1 = vld.sshfl [vmem:[%s232_s30] sm:$0x33 pattern:$0x76325410]  ;;  %v403_v5 = vld [vmem:[#allocation5 + $0x1e0] sm:$0xff]  ;;  %v404_v8 = vld [vmem:[#allocation5 + $0x1e8] sm:$0xff] }
  0x45   : > { %v288_v2 = vcombine.high %v2258_v1, %v2258_v1  ;;  %v295_v3 = vsel %vm293_vm0, %v2258_v1, 0  ;;  %v2318_v7 = vcombine.high %v399_v4, %v403_v5  ;;  %v2317_v9 = vcombine.low %v399_v4, %v403_v5  ;;  %v391_v10 = vld [vmem:[#allocation5 + $0x180] sm:$0xff]  ;;  %v392_v14 = vld [vmem:[#allocation5 + $0x188] sm:$0xff]  ;;  %v278_v17 = vld [vmem:[%s3687_s2] sm:$0xf]  ;;  %s2682_s6 = smov 33  }
  0x46   : > { %v395_v11 = vld [vmem:[#allocation5 + $0x1a0] sm:$0xff]  ;;  %v2320_v12 = vcombine.high %v400_v6, %v404_v8  ;;  %v396_v15 = vld [vmem:[#allocation5 + $0x1a8] sm:$0xff]  ;;  %vm289_vm1 = vcmask 31744   ;;  %v2319_v18 = vcombine.low %v400_v6, %v404_v8  ;;  %s2683_s7 = smov 32   ;;  %s2684_s8 = smov 31  }
  0x47   : > { %2259 = vmatprep.subr.msk.bf16.mxu0 %vm293_vm0, %v288_v2  ;;  %v2310_v13 = vcombine.high %v391_v10, %v395_v11  ;;  %v383_v16 = vld [vmem:[#allocation5 + $0x140] sm:$0xff]  ;;  %1111 = vmatprep.subr.bf16.mxu1 %v2318_v7  ;;  %v2312_v20 = vcombine.high %v392_v14, %v396_v15  ;;  %v2309_v21 = vcombine.low %v391_v10, %v395_v11  ;;  %v384_v23 = vld [vmem:[#allocation5 + $0x148] sm:$0xff]  ;;  %s2685_s9 = smov 1   ;;  %s2686_s24 = smov 127  }
  0x48   : > { %315 = vmatpush1.bf16.msra.mxu0 %v295_v3  ;;  %v387_v19 = vld [vmem:[#allocation5 + $0x160] sm:$0xff]  ;;  %1112 = vmatpush1.bf16.msra.mxu1 %v2317_v9  ;;  %v388_v24 = vld [vmem:[#allocation5 + $0x168] sm:$0xff]  ;;  %v2311_v27 = vcombine.low %v392_v14, %v396_v15  ;;  %s2687_s10 = smov 97   ;;  %s2688_s14 = smov 95  }
  0x49   : > { %1152 = vmatprep.subr.bf16.mxu0 %v2320_v12  ;;  %1113 = vmatprep.subr.bf16.mxu1 %v2310_v13  ;;  %v2302_v22 = vcombine.high %v383_v16, %v387_v19  ;;  %v375_v25 = vld [vmem:[#allocation5 + $0x100] sm:$0xff]  ;;  %v2304_v28 = vcombine.high %v384_v23, %v388_v24  ;;  %v2301_v29 = vcombine.low %v383_v16, %v387_v19  ;;  %v376_v31 = vld [vmem:[#allocation5 + $0x108] sm:$0xff]  ;;  %s2689_s11 = smov 96   ;;  %s2257_s29 = sshll.u32 %s2831_s12, 6 }
  0x4a   : > { %v379_v26 = vld [vmem:[#allocation5 + $0x120] sm:$0xff]  ;;  %v380_v32 = vld [vmem:[#allocation5 + $0x128] sm:$0xff]  ;;  %v2303_v35 = vcombine.low %v384_v23, %v388_v24  ;;  %s3318_s21 = scalar_lea.vmem [#allocation7], %s2257_s29  ;;  %s2395_s22 = sshll.u32 %s2659_s18, 10 }
  0x4b   : > { %2260 = vmatmul.mubr.msk.bf16.vlgmr.msra.gmra.mxu0 %vm289_vm1, %v278_v17  ;;  %v2294_v30 = vcombine.high %v375_v25, %v379_v26  ;;  %v367_v33 = vld [vmem:[#allocation5 + $0xc0] sm:$0xff]  ;;  %v2296_v36 = vcombine.high %v376_v31, %v380_v32  ;;  %v2293_v37 = vcombine.low %v375_v25, %v379_v26  ;;  %v368_v39 = vld [vmem:[#allocation5 + $0xc8] sm:$0xff]  ;;  %v2295_v43 = vcombine.low %v376_v31, %v380_v32  ;;  %s2123_s30 = sshll.u32 %s3318_s21, 4  ;;  %s3641_s25 = scalar_lea.hbm %s3689_s4, %s2395_s22  ;;  %s2124_s30 = int_to_ptr.vmem [resolvable:$true] %s2123_s30 }
  0x4c   : > { %1153 = vmatpush1.bf16.msra.mxu0 %v2319_v18  ;;  %1114 = vmatpush1.bf16.msra.mxu1 %v2309_v21  ;;  %v371_v34 = vld [vmem:[#allocation5 + $0xe0] sm:$0xff]  ;;  %v372_v40 = vld [vmem:[#allocation5 + $0xe8] sm:$0xff]  ;;  %s2107_s27 = scalar_lea.sflag [#allocation4], %s2831_s12  ;;  %s2690_s18 = smov [#allocation7]  }
  0x4d   : > { %1154 = vmatprep.subr.bf16.mxu0 %v2312_v20  ;;  %1115 = vmatprep.subr.bf16.mxu1 %v2302_v22  ;;  %v2286_v38 = vcombine.high %v367_v33, %v371_v34  ;;  %v359_v41 = vld [vmem:[#allocation5 + $0x80] sm:$0xff]  ;;  %v2288_v44 = vcombine.high %v368_v39, %v372_v40  ;;  %v2285_v45 = vcombine.low %v367_v33, %v371_v34  ;;  %v360_v47 = vld [vmem:[#allocation5 + $0x88] sm:$0xff] }
  0x4e   : > { %v363_v42 = vld [vmem:[#allocation5 + $0xa0] sm:$0xff]  ;;  %v364_v48 = vld [vmem:[#allocation5 + $0xa8] sm:$0xff]  ;;  %v2287_v51 = vcombine.low %v368_v39, %v372_v40 }
  0x4f   : > { %v2278_v46 = vcombine.high %v359_v41, %v363_v42  ;;  %v351_v49 = vld [vmem:[#allocation5 + $0x40] sm:$0xff]  ;;  %v2280_v52 = vcombine.high %v360_v47, %v364_v48  ;;  %v2277_v53 = vcombine.low %v359_v41, %v363_v42  ;;  %v352_v55 = vld [vmem:[#allocation5 + $0x48] sm:$0xff]  ;;  %v2279_v59 = vcombine.low %v360_v47, %v364_v48 }
  0x50   : > { %1155 = vmatpush1.bf16.msra.mxu0 %v2311_v27  ;;  %1116 = vmatpush1.bf16.msra.mxu1 %v2301_v29  ;;  %v355_v50 = vld [vmem:[#allocation5 + $0x60] sm:$0xff]  ;;  %v356_v56 = vld [vmem:[#allocation5 + $0x68] sm:$0xff] }
  0x51   : > { %1156 = vmatprep.subr.bf16.mxu0 %v2304_v28  ;;  %1117 = vmatprep.subr.bf16.mxu1 %v2294_v30  ;;  %v2270_v54 = vcombine.high %v351_v49, %v355_v50  ;;  %v343_v57 = vld [vmem:[#allocation5] sm:$0xff]  ;;  %v2272_v60 = vcombine.high %v352_v55, %v356_v56  ;;  %v2269_v61 = vcombine.low %v351_v49, %v355_v50  ;;  %v344_v63 = vld [vmem:[#allocation5 + $0x8] sm:$0xff] }
  0x52   : > { %v347_v58 = vld [vmem:[#allocation5 + $0x20] sm:$0xff]  ;;  %v348_v0 = vld [vmem:[#allocation5 + $0x28] sm:$0xff]  ;;  %v2271_v3 = vcombine.low %v352_v55, %v356_v56 }
  0x53   : > { %v2262_v62 = vcombine.high %v343_v57, %v347_v58  ;;  %v463_v1 = vld [vmem:[#allocation5 + $0x3c0] sm:$0xff]  ;;  %v2264_v4 = vcombine.high %v344_v63, %v348_v0  ;;  %v2261_v5 = vcombine.low %v343_v57, %v347_v58  ;;  %v464_v7 = vld [vmem:[#allocation5 + $0x3c8] sm:$0xff]  ;;  %v2263_v11 = vcombine.low %v344_v63, %v348_v0 }
  0x54   : > { %1157 = vmatpush1.bf16.msra.mxu0 %v2303_v35  ;;  %1118 = vmatpush1.bf16.msra.mxu1 %v2293_v37  ;;  %v467_v2 = vld [vmem:[#allocation5 + $0x3e0] sm:$0xff]  ;;  %v468_v8 = vld [vmem:[#allocation5 + $0x3e8] sm:$0xff] }
  0x55   : > { %1158 = vmatprep.subr.bf16.mxu0 %v2296_v36  ;;  %1119 = vmatprep.subr.bf16.mxu1 %v2286_v38  ;;  %v2382_v6 = vcombine.high %v463_v1, %v467_v2  ;;  %v455_v9 = vld [vmem:[#allocation5 + $0x380] sm:$0xff]  ;;  %v2384_v12 = vcombine.high %v464_v7, %v468_v8  ;;  %v2381_v13 = vcombine.low %v463_v1, %v467_v2  ;;  %v456_v15 = vld [vmem:[#allocation5 + $0x388] sm:$0xff] }
  0x56   : > { %v459_v10 = vld [vmem:[#allocation5 + $0x3a0] sm:$0xff]  ;;  %v460_v16 = vld [vmem:[#allocation5 + $0x3a8] sm:$0xff]  ;;  %v2383_v19 = vcombine.low %v464_v7, %v468_v8  ;;  %v402_v7 = vld [vmem:[#allocation5 + $0x1d8] sm:$0xff] }
  0x57   : > { %v2374_v14 = vcombine.high %v455_v9, %v459_v10  ;;  %v447_v17 = vld [vmem:[#allocation5 + $0x340] sm:$0xff]  ;;  %v2376_v20 = vcombine.high %v456_v15, %v460_v16  ;;  %v2373_v21 = vcombine.low %v455_v9, %v459_v10  ;;  %v448_v23 = vld [vmem:[#allocation5 + $0x348] sm:$0xff]  ;;  %v2375_v27 = vcombine.low %v456_v15, %v460_v16  ;;  %v406_v9 = vld [vmem:[#allocation5 + $0x1f8] sm:$0xff] }
  0x58   : > { %1159 = vmatpush1.bf16.msra.mxu0 %v2295_v43  ;;  %1120 = vmatpush1.bf16.msra.mxu1 %v2285_v45  ;;  %v451_v18 = vld [vmem:[#allocation5 + $0x360] sm:$0xff]  ;;  %v452_v24 = vld [vmem:[#allocation5 + $0x368] sm:$0xff]  ;;  %v2675_v15 = vmov 2   ;;  %v2676_v16 = vmov 4  }
  0x59   : > { %1160 = vmatprep.subr.bf16.mxu0 %v2288_v44  ;;  %1121 = vmatprep.subr.bf16.mxu1 %v2278_v46  ;;  %v2366_v22 = vcombine.high %v447_v17, %v451_v18  ;;  %v439_v25 = vld [vmem:[#allocation5 + $0x300] sm:$0xff]  ;;  %v2368_v28 = vcombine.high %v448_v23, %v452_v24  ;;  %v2365_v29 = vcombine.low %v447_v17, %v451_v18  ;;  %v440_v31 = vld [vmem:[#allocation5 + $0x308] sm:$0xff]  ;;  %v2677_v17 = vmov 6  }
  0x5a   : > { %v443_v26 = vld [vmem:[#allocation5 + $0x320] sm:$0xff]  ;;  %v444_v32 = vld [vmem:[#allocation5 + $0x328] sm:$0xff]  ;;  %v2367_v35 = vcombine.low %v448_v23, %v452_v24  ;;  %v398_v23 = vld [vmem:[#allocation5 + $0x1b8] sm:$0xff] }
  0x5b   : > { %v2358_v30 = vcombine.high %v439_v25, %v443_v26  ;;  %v431_v33 = vld [vmem:[#allocation5 + $0x2c0] sm:$0xff]  ;;  %v2360_v36 = vcombine.high %v440_v31, %v444_v32  ;;  %v2357_v37 = vcombine.low %v439_v25, %v443_v26  ;;  %v432_v39 = vld [vmem:[#allocation5 + $0x2c8] sm:$0xff]  ;;  %v2359_v43 = vcombine.low %v440_v31, %v444_v32  ;;  %v386_v31 = vld [vmem:[#allocation5 + $0x158] sm:$0xff] }
  0x5c   : > { %1161 = vmatpush1.bf16.msra.mxu0 %v2287_v51  ;;  %1122 = vmatpush1.bf16.msra.mxu1 %v2277_v53  ;;  %v435_v34 = vld [vmem:[#allocation5 + $0x2e0] sm:$0xff]  ;;  %v436_v40 = vld [vmem:[#allocation5 + $0x2e8] sm:$0xff]  ;;  %v390_v32 = vld [vmem:[#allocation5 + $0x178] sm:$0xff] }
  0x5d   : > { %1162 = vmatprep.subr.bf16.mxu0 %v2280_v52  ;;  %1123 = vmatprep.subr.bf16.mxu1 %v2270_v54  ;;  %v2350_v38 = vcombine.high %v431_v33, %v435_v34  ;;  %v423_v41 = vld [vmem:[#allocation5 + $0x280] sm:$0xff]  ;;  %v2352_v44 = vcombine.high %v432_v39, %v436_v40  ;;  %v2349_v45 = vcombine.low %v431_v33, %v435_v34  ;;  %v424_v47 = vld [vmem:[#allocation5 + $0x288] sm:$0xff] }
  0x5e   : > { %v427_v42 = vld [vmem:[#allocation5 + $0x2a0] sm:$0xff]  ;;  %v428_v48 = vld [vmem:[#allocation5 + $0x2a8] sm:$0xff]  ;;  %v2351_v51 = vcombine.low %v432_v39, %v436_v40  ;;  %v381_v39 = vld [vmem:[#allocation5 + $0x130] sm:$0xff] }
  0x5f   : > { %v2342_v46 = vcombine.high %v423_v41, %v427_v42  ;;  %v415_v49 = vld [vmem:[#allocation5 + $0x240] sm:$0xff]  ;;  %v2344_v52 = vcombine.high %v424_v47, %v428_v48  ;;  %v2341_v53 = vcombine.low %v423_v41, %v427_v42  ;;  %v416_v55 = vld [vmem:[#allocation5 + $0x248] sm:$0xff]  ;;  %v2343_v57 = vcombine.low %v424_v47, %v428_v48  ;;  %v378_v40 = vld [vmem:[#allocation5 + $0x118] sm:$0xff] }
  0x60   : > { %1163 = vmatpush1.bf16.msra.mxu0 %v2279_v59  ;;  %1124 = vmatpush1.bf16.msra.mxu1 %v2269_v61  ;;  %v419_v50 = vld [vmem:[#allocation5 + $0x260] sm:$0xff]  ;;  %v420_v56 = vld [vmem:[#allocation5 + $0x268] sm:$0xff]  ;;  %v382_v41 = vld [vmem:[#allocation5 + $0x138] sm:$0xff] }
  0x61   : > { %1164 = vmatprep.subr.bf16.mxu0 %v2272_v60  ;;  %1125 = vmatprep.subr.bf16.mxu1 %v2262_v62  ;;  %v2334_v54 = vcombine.high %v415_v49, %v419_v50  ;;  %v2336_v58 = vcombine.high %v416_v55, %v420_v56  ;;  %v2333_v59 = vcombine.low %v415_v49, %v419_v50  ;;  %v407_v61 = vld [vmem:[#allocation5 + $0x200] sm:$0xff]  ;;  %v408_v63 = vld [vmem:[#allocation5 + $0x208] sm:$0xff]  ;;  %v373_v47 = vld [vmem:[#allocation5 + $0xf0] sm:$0xff] }
  0x62   : > { %v2335_v60 = vcombine.low %v416_v55, %v420_v56  ;;  %v411_v62 = vld [vmem:[#allocation5 + $0x220] sm:$0xff]  ;;  %v412_v1 = vld [vmem:[#allocation5 + $0x228] sm:$0xff]  ;;  %v370_v48 = vld [vmem:[#allocation5 + $0xd8] sm:$0xff] }
  0x63   : > { %v2326_v0 = vcombine.high %v407_v61, %v411_v62  ;;  %v2327_v2 = vcombine.low %v408_v63, %v412_v1  ;;  %v374_v49 = vld [vmem:[#allocation5 + $0xf8] sm:$0xff]  ;;  %v365_v55 = vld [vmem:[#allocation5 + $0xb0] sm:$0xff] }
  0x64   : > { %1165 = vmatpush1.bf16.msra.mxu0 %v2271_v3  ;;  %1126 = vmatpush1.bf16.msra.mxu1 %v2261_v5  ;;  %v2328_v3 = vcombine.high %v408_v63, %v412_v1  ;;  %v401_v5 = vld [vmem:[#allocation5 + $0x1d0] sm:$0xff]  ;;  %v362_v56 = vld [vmem:[#allocation5 + $0x98] sm:$0xff] }
  0x65   : > { %1166 = vmatprep.subr.bf16.mxu0 %v2264_v4  ;;  %1127 = vmatprep.subr.bf16.mxu1 %v2382_v6  ;;  %v2325_v4 = vcombine.low %v407_v61, %v411_v62  ;;  %v405_v6 = vld [vmem:[#allocation5 + $0x1f0] sm:$0xff]  ;;  %v358_v1 = vld [vmem:[#allocation5 + $0x78] sm:$0xff] }
  0x66   : > { %v2322_v8 = vcombine.high %v401_v5, %v405_v6  ;;  %v2321_v10 = vcombine.low %v401_v5, %v405_v6  ;;  %v353_v62 = vld [vmem:[#allocation5 + $0x50] sm:$0xff] }
  0x67   : > { %v357_v63 = vld [vmem:[#allocation5 + $0x70] sm:$0xff] }
  0x68   : > { %1167 = vmatpush1.bf16.msra.mxu0 %v2263_v11  ;;  %1128 = vmatpush2.bf16.msra.mxu1 %v2381_v13  ;;  %v2323_v11 = vcombine.low %v402_v7, %v406_v9  ;;  %v2849_v13 = vld [vmem:[%s3688_s3] sm:$0xff]  ;;  %v345_v6 = vld [vmem:[#allocation5 + $0x10] sm:$0xff] }
  0x69   : > { %1168 = vmatprep.subr.bf16.mxu0 %v2384_v12  ;;  %1129 = vmatprep.subr.bf16.mxu1 %v2374_v14  ;;  %v2324_v12 = vcombine.high %v402_v7, %v406_v9  ;;  %v2674_v14 = vmov 1   ;;  %v349_v7 = vld [vmem:[#allocation5 + $0x30] sm:$0xff]  ;;  %v350_v9 = vld [vmem:[#allocation5 + $0x38] sm:$0xff] }
  0x6a   : > { %1512 = vperm.xlu0 %2488, %v2849_v13  }
  0x6c   : > { %1169 = vmatpush2.bf16.msra.mxu0 %v2383_v19  ;;  %1130 = vmatpush2.bf16.msra.mxu1 %v2373_v21  ;;  %v393_v19 = vld [vmem:[#allocation5 + $0x190] sm:$0xff] }
  0x6d   : > { %1170 = vmatprep.subr.bf16.mxu0 %v2376_v20  ;;  %1131 = vmatprep.subr.bf16.mxu1 %v2366_v22  ;;  %v397_v21 = vld [vmem:[#allocation5 + $0x1b0] sm:$0xff]  ;;  %v394_v22 = vld [vmem:[#allocation5 + $0x198] sm:$0xff] }
  0x6e   : > { %2489 = vset.pattern.permute.xlu0 %v2674_v14  ;;  %v2313_v34 = vcombine.low %v393_v19, %v397_v21 }
  0x6f   : > { %1581 = vperm.xlu0 %2489, %v2849_v13  }
  0x70   : > { %1171 = vmatpush2.bf16.msra.mxu0 %v2375_v27  ;;  %1132 = vmatpush2.bf16.msra.mxu1 %v2365_v29  ;;  %v385_v27 = vld [vmem:[#allocation5 + $0x150] sm:$0xff]  ;;  %v2316_v29 = vcombine.high %v394_v22, %v398_v23 }
  0x71   : > { %1172 = vmatprep.subr.bf16.mxu0 %v2368_v28  ;;  %1133 = vmatprep.subr.bf16.mxu1 %v2358_v30  ;;  %v2314_v28 = vcombine.high %v393_v19, %v397_v21  ;;  %v389_v30 = vld [vmem:[#allocation5 + $0x170] sm:$0xff]  ;;  %v2265_v19 = vcombine.low %v345_v6, %v349_v7 }
  0x72   : > { %v2305_v42 = vcombine.low %v385_v27, %v389_v30 }
  0x73   : > { %2490 = vset.pattern.permute.xlu0 %v2675_v15  ;;  %v465_v15 = vld [vmem:[#allocation5 + $0x3d0] sm:$0xff] }
  0x74   : > { %1173 = vmatpush2.bf16.msra.mxu0 %v2367_v35  ;;  %1134 = vmatpush2.bf16.msra.mxu1 %v2357_v37  ;;  %v2315_v35 = vcombine.low %v394_v22, %v398_v23  ;;  %v2308_v37 = vcombine.high %v386_v31, %v390_v32  ;;  %v457_v23 = vld [vmem:[#allocation5 + $0x390] sm:$0xff] }
  0x75   : > { %1174 = vmatprep.subr.bf16.mxu0 %v2360_v36  ;;  %1135 = vmatprep.subr.bf16.mxu1 %v2350_v38  ;;  %v2306_v36 = vcombine.high %v385_v27, %v389_v30  ;;  %v377_v38 = vld [vmem:[#allocation5 + $0x110] sm:$0xff]  ;;  %v462_v27 = vld [vmem:[#allocation5 + $0x3b8] sm:$0xff] }
  0x76   : > { %1658 = vperm.xlu0 %2490, %v2849_v13   ;;  %v2297_v50 = vcombine.low %v377_v38, %v381_v39 }
  0x78   : > { %1175 = vmatpush2.bf16.msra.mxu0 %v2359_v43  ;;  %1136 = vmatpush2.bf16.msra.mxu1 %v2349_v45  ;;  %v2307_v43 = vcombine.low %v386_v31, %v390_v32  ;;  %v2300_v45 = vcombine.high %v378_v40, %v382_v41  ;;  %v449_v32 = vld [vmem:[#allocation5 + $0x350] sm:$0xff] }
  0x79   : > { %1176 = vmatprep.subr.bf16.mxu0 %v2352_v44  ;;  %1137 = vmatprep.subr.bf16.mxu1 %v2342_v46  ;;  %v2298_v44 = vcombine.high %v377_v38, %v381_v39  ;;  %v369_v46 = vld [vmem:[#allocation5 + $0xd0] sm:$0xff] }
  0x7a   : > { %2492 = vset.pattern.permute.xlu0 %v2676_v16  ;;  %v469_v16 = vld [vmem:[#allocation5 + $0x3f0] sm:$0xff] }
  0x7b   : > { %1747 = vperm.xlu0 %2492, %v2849_v13   ;;  %v2386_v21 = vcombine.high %v465_v15, %v469_v16 }
  0x7c   : > { %1177 = vmatpush2.bf16.msra.mxu0 %v2351_v51  ;;  %1138 = vmatpush2.bf16.msra.mxu1 %v2341_v53  ;;  %v2299_v51 = vcombine.low %v378_v40, %v382_v41  ;;  %v2292_v53 = vcombine.high %v370_v48, %v374_v49  ;;  %v441_v40 = vld [vmem:[#allocation5 + $0x310] sm:$0xff] }
  0x7d   : > { %1178 = vmatprep.subr.bf16.mxu0 %v2344_v52  ;;  %1139 = vmatprep.subr.bf16.mxu1 %v2334_v54  ;;  %v2290_v52 = vcombine.high %v369_v46, %v373_v47  ;;  %v361_v54 = vld [vmem:[#allocation5 + $0x90] sm:$0xff] }
  0x7e   : > { %v445_v41 = vld [vmem:[#allocation5 + $0x330] sm:$0xff] }
  0x7f   : > { %2494 = vset.pattern.permute.xlu0 %v2677_v17  ;;  %v466_v17 = vld [vmem:[#allocation5 + $0x3d8] sm:$0xff] }
  0x80   : > { %1179 = vmatpush2.bf16.msra.mxu0 %v2343_v57  ;;  %1140 = vmatpush2.bf16.msra.mxu1 %v2333_v59  ;;  %v366_v57 = vld [vmem:[#allocation5 + $0xb8] sm:$0xff]  ;;  %v2291_v59 = vcombine.low %v370_v48, %v374_v49  ;;  %v433_v48 = vld [vmem:[#allocation5 + $0x2d0] sm:$0xff] }
  0x81   : > { %1180 = vmatprep.subr.bf16.mxu0 %v2336_v58  ;;  %1141 = vmatprep.subr.bf16.mxu1 %v2326_v0  ;;  %v2289_v58 = vcombine.low %v369_v46, %v373_v47  ;;  %v2284_v61 = vcombine.high %v362_v56, %v366_v57  ;;  %v354_v0 = vld [vmem:[#allocation5 + $0x58] sm:$0xff]  ;;  %v2362_v46 = vcombine.high %v441_v40, %v445_v41  ;;  %v437_v49 = vld [vmem:[#allocation5 + $0x2f0] sm:$0xff] }
  0x82   : > { %1893 = vperm.xlu0 %2494, %v2849_v13   ;;  %v2276_v5 = vcombine.high %v354_v0, %v358_v1 }
  0x84   : > { %1181 = vmatpush2.bf16.msra.mxu0 %v2335_v60  ;;  %1142 = vmatpush2.bf16.msra.mxu1 %v2325_v4  ;;  %v2282_v60 = vcombine.high %v361_v54, %v365_v55  ;;  %v2274_v4 = vcombine.high %v353_v62, %v357_v63 }
  0x85   : > { %1182 = vmatprep.subr.bf16.mxu0 %v2328_v3  ;;  %1193 = vmatprep.subr.bf16.mxu1 %v2322_v8  ;;  %v2283_v3 = vcombine.low %v362_v56, %v366_v57  ;;  %v346_v8 = vld [vmem:[#allocation5 + $0x18] sm:$0xff]  ;;  %v425_v56 = vld [vmem:[#allocation5 + $0x290] sm:$0xff] }
  0x86   : > { %v2268_v14 = vcombine.high %v346_v8, %v350_v9  ;;  %v429_v57 = vld [vmem:[#allocation5 + $0x2b0] sm:$0xff] }
  0x88   : > { %1183 = vmatpush2.bf16.msra.mxu0 %v2327_v2  ;;  %v2281_v2 = vcombine.low %v361_v54, %v365_v55  ;;  %v2354_v54 = vcombine.high %v433_v48, %v437_v49 }
  0x89   : > { %1234 = vmatprep.subr.bf16.mxu0 %v2324_v12  ;;  %v2266_v12 = vcombine.high %v345_v6, %v349_v7 }
 0x10b   : > { %v334_v18 = vpop.f32.mrf.mxu0 }
 0x10c   : > { %v2856_v25 = vpack.c.bf16 %v334_v18, %v334_v18  ;;  %v470_v18 = vld [vmem:[#allocation5 + $0x3f8] sm:$0xff] }
 0x10d   : > { %v336_v20 = vpop.f32.mrf.mxu0  ;;  %v2388_v22 = vcombine.high %v466_v17, %v470_v18 }
 0x10e   : > { %v342_v24 = vpack.c.bf16 %v336_v20, %v336_v20  ;;  %v2267_v20 = vcombine.low %v346_v8, %v350_v9  ;;  %v409_v8 = vld [vmem:[#allocation5 + $0x210] sm:$0xff] }
 0x10f   : > { %v338_v26 = vpop.f32.mrf.mxu0  ;;  %v413_v9 = vld [vmem:[#allocation5 + $0x230] sm:$0xff] }
 0x110   : > { %1143 = vmatprep.mubr.bf16.mxu1 %v342_v24  ;;  %1184 = vmatprep.mubr.bf16.mxu0 %v342_v24  ;;  %v458_v26 = vld [vmem:[#allocation5 + $0x398] sm:$0xff] }
 0x111   : > { %v339_v33 = vpop.f32.mrf.mxu0  ;;  %1144 = vmatmul.mubr.bf16.vlgmr.msra.gmra.mxu1 %v2856_v25  ;;  %1185 = vmatmul.mubr.bf16.vlgmr.msra.gmra.mxu0 %v2856_v25  ;;  %v2380_v31 = vcombine.high %v458_v26, %v462_v27 }
 0x112   : > { %1194 = vmatpush1.bf16.msra.mxu1 %v2321_v10  ;;  %1235 = vmatpush1.bf16.msra.mxu0 %v2323_v11  ;;  %v2273_v10 = vcombine.low %v353_v62, %v357_v63  ;;  %v2275_v11 = vcombine.low %v354_v0, %v358_v1  ;;  %v453_v33 = vld [vmem:[#allocation5 + $0x370] sm:$0xff]  ;;  %v2346_v62 = vcombine.high %v425_v56, %v429_v57 }
 0x113   : > { %1225 = vmatprep.mubr.bf16.mxu1 %v342_v24  ;;  %1266 = vmatprep.mubr.bf16.mxu0 %v342_v24  ;;  %v461_v24 = vld [vmem:[#allocation5 + $0x3b0] sm:$0xff]  ;;  %v2370_v38 = vcombine.high %v449_v32, %v453_v33 }
 0x114   : > { %1195 = vmatprep.subr.bf16.mxu1 %v2314_v28  ;;  %1236 = vmatprep.subr.bf16.mxu0 %v2316_v29  ;;  %v2385_v28 = vcombine.low %v465_v15, %v469_v16  ;;  %v2387_v29 = vcombine.low %v466_v17, %v470_v18  ;;  %v2378_v30 = vcombine.high %v457_v23, %v461_v24  ;;  %v417_v0 = vld [vmem:[#allocation5 + $0x250] sm:$0xff] }
 0x115   : > { %v421_v1 = vld [vmem:[#allocation5 + $0x270] sm:$0xff]  ;;  %v2330_v15 = vcombine.high %v409_v8, %v413_v9  ;;  %v2329_v17 = vcombine.low %v409_v8, %v413_v9 }
 0x116   : > { %1196 = vmatpush1.bf16.msra.mxu1 %v2313_v34  ;;  %1237 = vmatpush1.bf16.msra.mxu0 %v2315_v35  ;;  %v450_v34 = vld [vmem:[#allocation5 + $0x358] sm:$0xff]  ;;  %v2338_v6 = vcombine.high %v417_v0, %v421_v1 }
 0x117   : > { %1197 = vmatprep.subr.bf16.mxu1 %v2306_v36  ;;  %1238 = vmatprep.subr.bf16.mxu0 %v2308_v37  ;;  %v454_v35 = vld [vmem:[#allocation5 + $0x378] sm:$0xff]  ;;  %v2377_v36 = vcombine.low %v457_v23, %v461_v24  ;;  %v2379_v37 = vcombine.low %v458_v26, %v462_v27 }
 0x118   : > { %v2372_v39 = vcombine.high %v450_v34, %v454_v35 }
 0x11a   : > { %1198 = vmatpush1.bf16.msra.mxu1 %v2305_v42  ;;  %1239 = vmatpush1.bf16.msra.mxu0 %v2307_v43  ;;  %v442_v42 = vld [vmem:[#allocation5 + $0x318] sm:$0xff] }
 0x11b   : > { %1199 = vmatprep.subr.bf16.mxu1 %v2298_v44  ;;  %1240 = vmatprep.subr.bf16.mxu0 %v2300_v45  ;;  %v446_v43 = vld [vmem:[#allocation5 + $0x338] sm:$0xff]  ;;  %v2369_v44 = vcombine.low %v449_v32, %v453_v33  ;;  %v2371_v45 = vcombine.low %v450_v34, %v454_v35 }
 0x11c   : > { %v2364_v47 = vcombine.high %v442_v42, %v446_v43 }
 0x11e   : > { %1200 = vmatpush1.bf16.msra.mxu1 %v2297_v50  ;;  %1241 = vmatpush1.bf16.msra.mxu0 %v2299_v51  ;;  %v434_v50 = vld [vmem:[#allocation5 + $0x2d8] sm:$0xff] }
 0x11f   : > { %1201 = vmatprep.subr.bf16.mxu1 %v2290_v52  ;;  %1242 = vmatprep.subr.bf16.mxu0 %v2292_v53  ;;  %v438_v51 = vld [vmem:[#allocation5 + $0x2f8] sm:$0xff]  ;;  %v2361_v52 = vcombine.low %v441_v40, %v445_v41  ;;  %v2363_v53 = vcombine.low %v442_v42, %v446_v43 }
 0x120   : > { %v2356_v55 = vcombine.high %v434_v50, %v438_v51 }
 0x122   : > { %1202 = vmatpush1.bf16.msra.mxu1 %v2289_v58  ;;  %1243 = vmatpush1.bf16.msra.mxu0 %v2291_v59  ;;  %v426_v58 = vld [vmem:[#allocation5 + $0x298] sm:$0xff] }
 0x123   : > { %1203 = vmatprep.subr.bf16.mxu1 %v2282_v60  ;;  %1244 = vmatprep.subr.bf16.mxu0 %v2284_v61  ;;  %v430_v59 = vld [vmem:[#allocation5 + $0x2b8] sm:$0xff]  ;;  %v2353_v60 = vcombine.low %v433_v48, %v437_v49  ;;  %v2355_v61 = vcombine.low %v434_v50, %v438_v51 }
 0x124   : > { %v2348_v63 = vcombine.high %v426_v58, %v430_v59 }
 0x126   : > { %1204 = vmatpush1.bf16.msra.mxu1 %v2281_v2  ;;  %1245 = vmatpush1.bf16.msra.mxu0 %v2283_v3  ;;  %v418_v2 = vld [vmem:[#allocation5 + $0x258] sm:$0xff] }
 0x127   : > { %1205 = vmatprep.subr.bf16.mxu1 %v2274_v4  ;;  %1246 = vmatprep.subr.bf16.mxu0 %v2276_v5  ;;  %v422_v3 = vld [vmem:[#allocation5 + $0x278] sm:$0xff]  ;;  %v2345_v4 = vcombine.low %v425_v56, %v429_v57  ;;  %v2347_v5 = vcombine.low %v426_v58, %v430_v59 }
 0x128   : > { %v2340_v7 = vcombine.high %v418_v2, %v422_v3 }
 0x12a   : > { %1206 = vmatpush1.bf16.msra.mxu1 %v2273_v10  ;;  %1247 = vmatpush1.bf16.msra.mxu0 %v2275_v11  ;;  %v410_v10 = vld [vmem:[#allocation5 + $0x218] sm:$0xff] }
 0x12b   : > { %1207 = vmatprep.subr.bf16.mxu1 %v2266_v12  ;;  %1248 = vmatprep.subr.bf16.mxu0 %v2268_v14  ;;  %v414_v11 = vld [vmem:[#allocation5 + $0x238] sm:$0xff]  ;;  %v2337_v12 = vcombine.low %v417_v0, %v421_v1  ;;  %v2339_v14 = vcombine.low %v418_v2, %v422_v3 }
 0x12c   : > { %v2332_v16 = vcombine.high %v410_v10, %v414_v11  ;;  %v2331_v18 = vcombine.low %v410_v10, %v414_v11 }
 0x12e   : > { %1208 = vmatpush1.bf16.msra.mxu1 %v2265_v19  ;;  %1249 = vmatpush1.bf16.msra.mxu0 %v2267_v20  ;;  %v2678_v19 = vmov 3   ;;  %v2679_v20 = vmov 7  }
 0x12f   : > { %1209 = vmatprep.subr.bf16.mxu1 %v2386_v21  ;;  %1250 = vmatprep.subr.bf16.mxu0 %v2388_v22  ;;  %v2680_v21 = vmov 5   ;;  %v2681_v22 = vmov 8  }
 0x130   : > { %2491 = vset.pattern.permute.xlu1 %v2678_v19  ;;  %2495 = vset.pattern.permute.xlu0 %v2679_v20 }
 0x131   : > { %1727 = vperm.xlu1 %2491, %v2849_v13   ;;  %1962 = vperm.xlu0 %2495, %v2849_v13  }
 0x132   : > { %1210 = vmatpush2.bf16.msra.mxu1 %v2385_v28  ;;  %1251 = vmatpush2.bf16.msra.mxu0 %v2387_v29 }
 0x133   : > { %1211 = vmatprep.subr.bf16.mxu1 %v2378_v30  ;;  %1252 = vmatprep.subr.bf16.mxu0 %v2380_v31 }
 0x135   : > { %2493 = vset.pattern.permute.xlu1 %v2680_v21  ;;  %2496 = vset.pattern.permute.xlu0 %v2681_v22 }
 0x136   : > { %1212 = vmatpush2.bf16.msra.mxu1 %v2377_v36  ;;  %1253 = vmatpush2.bf16.msra.mxu0 %v2379_v37 }
 0x137   : > { %1213 = vmatprep.subr.bf16.mxu1 %v2370_v38  ;;  %1254 = vmatprep.subr.bf16.mxu0 %v2372_v39 }
 0x138   : > { %1816 = vperm.xlu1 %2493, %v2849_v13   ;;  %2039 = vperm.xlu0 %2496, %v2849_v13  }
 0x13a   : > { %1214 = vmatpush2.bf16.msra.mxu1 %v2369_v44  ;;  %1255 = vmatpush2.bf16.msra.mxu0 %v2371_v45 }
 0x13b   : > { %1215 = vmatprep.subr.bf16.mxu1 %v2362_v46  ;;  %1256 = vmatprep.subr.bf16.mxu0 %v2364_v47 }
 0x13e   : > { %1216 = vmatpush2.bf16.msra.mxu1 %v2361_v52  ;;  %1257 = vmatpush2.bf16.msra.mxu0 %v2363_v53 }
 0x13f   : > { %1217 = vmatprep.subr.bf16.mxu1 %v2354_v54  ;;  %1258 = vmatprep.subr.bf16.mxu0 %v2356_v55 }
 0x142   : > { %1218 = vmatpush2.bf16.msra.mxu1 %v2353_v60  ;;  %1259 = vmatpush2.bf16.msra.mxu0 %v2355_v61 }
 0x143   : > { %1219 = vmatprep.subr.bf16.mxu1 %v2346_v62  ;;  %1260 = vmatprep.subr.bf16.mxu0 %v2348_v63 }
 0x146   : > { %1220 = vmatpush2.bf16.msra.mxu1 %v2345_v4  ;;  %1261 = vmatpush2.bf16.msra.mxu0 %v2347_v5  ;;  %v2944_v4 = vpop.permute.xlu0 %1512 }
 0x147   : > { %1221 = vmatprep.subr.bf16.mxu1 %v2338_v6  ;;  %1262 = vmatprep.subr.bf16.mxu0 %v2340_v7 }
 0x14a   : > { %1222 = vmatpush2.bf16.msra.mxu1 %v2337_v12  ;;  %1263 = vmatpush2.bf16.msra.mxu0 %v2339_v14  ;;  %v2950_v7 = vpop.permute.xlu0 %1581 }
 0x14b   : > { %1223 = vmatprep.subr.bf16.mxu1 %v2330_v15  ;;  %1264 = vmatprep.subr.bf16.mxu0 %v2332_v16 }
 0x14e   : > { %1224 = vmatpush2.bf16.msra.mxu1 %v2329_v17  ;;  %1265 = vmatpush2.bf16.msra.mxu0 %v2331_v18  ;;  %v2960_v8 = vpop.permute.xlu0 %1658 }
 0x151   : > { %1226 = vmatmul.mubr.bf16.vlgmr.msra.gmra.mxu1 %v2856_v25  ;;  %1267 = vmatmul.mubr.bf16.vlgmr.msra.gmra.mxu0 %v2856_v25 }
 0x152   : > { %v2966_v10 = vpop.permute.xlu0 %1747 }
 0x156   : > { %v2974_v14 = vpop.permute.xlu0 %1893 }
 0x1ac   : > { %v2984_v19 = vpop.permute.xlu0 %1962  ;;  %v2988_v21 = vpop.permute.xlu1 %1727 }
 0x1b3   : > { %v2996_v22 = vpop.permute.xlu0 %2039 }
 0x1d1   : > { %v1145_v23 = vpop.f32.mrf.mxu1  ;;  %v1186_v24 = vpop.f32.mrf.mxu0 }
 0x1d2   : > { %v1283_v26 = vmul.f32 0.70710677, %v1145_v23  ;;  %v1285_v25 = vmul.f32 0.70710677, %v1186_v24  ;;  %v1275_v35 = vmul.f32 0.5, %v1145_v23  ;;  %v1277_v37 = vmul.f32 0.5, %v1186_v24  ;;  %v3000_v23 = vpop.permute.xlu1 %1816 }
 0x1d3   : > { %v1147_v27 = vpop.f32.mrf.mxu1  ;;  %v1188_v28 = vpop.f32.mrf.mxu0 }
 0x1d4   : > { %2497 = verf.f32 %v1283_v26  ;;  %v1284_v40 = vmul.f32 0.70710677, %v1147_v27  ;;  %v1286_v41 = vmul.f32 0.70710677, %v1188_v28  ;;  %v1276_v46 = vmul.f32 0.5, %v1147_v27 }
 0x1d5   : > { %2499 = verf.f32 %v1285_v25  ;;  %v1149_v29 = vpop.f32.mrf.mxu1  ;;  %v1190_v30 = vpop.f32.mrf.mxu0  ;;  %v1278_v47 = vmul.f32 0.5, %v1188_v28 }
 0x1d6   : > { %2501 = verf.f32 %v1284_v40 }
 0x1d7   : > { %v1150_v31 = vpop.f32.mrf.mxu1  ;;  %v1191_v32 = vpop.f32.mrf.mxu0  ;;  %2503 = verf.f32 %v1286_v41 }
 0x1e1   : > { %v2498_v33 = vpop.eup %2497 }
 0x1e2   : > { %v2500_v34 = vpop.eup %2499  ;;  %v1299_v36 = vadd.f32 1.0, %v2498_v33 }
 0x1e3   : > { %v1301_v38 = vadd.f32 1.0, %v2500_v34  ;;  %v2502_v42 = vpop.eup %2501 }
 0x1e4   : > { %v2866_v39 = vmul.f32 %v1299_v36, %v1275_v35  ;;  %v2504_v43 = vpop.eup %2503  ;;  %v1300_v44 = vadd.f32 1.0, %v2502_v42  ;;  %v1315_v35 = vlaneseq }
 0x1e5   : > { %v2868_v13 = vmul.f32 %v1301_v38, %v1277_v37  ;;  %v1302_v45 = vadd.f32 1.0, %v2504_v43 }
 0x1e6   : > { %1461 = vrot.lane.b32.xlu0 %v2866_v39, %s2682_s6  ;;  %v2902_v48 = vmul.f32 %v1300_v44, %v1276_v46  ;;  %v3042_v38 = vand.u32 127, %v1315_v35 }
 0x1e7   : > { %1465 = vrot.lane.b32.xlu1 %v2868_v13, %s2682_s6  ;;  %v2904_v49 = vmul.f32 %v1302_v45, %v1278_v47 }
 0x1e8   : > { %v1319_v41 = vadd.s32 384, %v3042_v38  ;;  %vm1477_vm2 = vcmp.lt.s32.totalorder %v3042_v38, 33  ;;  %vm1547_vm4 = vcmp.lt.s32.totalorder %v3042_v38, 32  ;;  %vm3696_vm5 = vcmp.lt.s32.totalorder %v3042_v38, 31 }
 0x1e9   : > { %vm3698_vm9 = vcmp.lt.s32.totalorder %v3042_v38, 1  ;;  %vm3697_vm12 = vcmp.lt.s32.totalorder %v3042_v38, 127  ;;  %vm3695_vm13 = vcmp.lt.s32.totalorder %v3042_v38, 97  ;;  %vm3694_vm15 = vcmp.lt.s32.totalorder %v3042_v38, 96 }
 0x1ea   : > { %1535 = vrot.lane.b32.xlu0 %v2868_v13, %s2683_s7  ;;  %v1349_v43 = vand.u32 31, %v1319_v41  ;;  %vm2005_vm0 = vcmp.lt.s32.totalorder %v3042_v38, 95 }
 0x1eb   : > { %1531 = vrot.lane.b32.xlu1 %v2866_v39, %s2683_s7 }
 0x1ec   : > { %vm3063_vm3 = vcmp.ne.s32.totalorder %v1349_v43, 0  ;;  %vm3094_vm8 = vcmp.ne.s32.totalorder %v1349_v43, 31 }
 0x1ee   : > { %1612 = vrot.lane.b32.xlu0 %v2868_v13, %s2684_s8 }
 0x1ef   : > { %1608 = vrot.lane.b32.xlu1 %v2866_v39, %s2684_s8 }
 0x1f2   : > { %1681 = vrot.lane.b32.xlu0 %v2868_v13, %s2685_s9 }
 0x1f3   : > { %1677 = vrot.lane.b32.xlu1 %v2866_v39, %s2685_s9 }
 0x1f6   : > { %1770 = vrot.lane.b32.xlu0 %v2868_v13, %s2686_s24 }
 0x1f7   : > { %1766 = vrot.lane.b32.xlu1 %v2866_v39, %s2686_s24 }
 0x1fa   : > { %1847 = vrot.lane.b32.xlu0 %v2868_v13, %s2687_s10 }
 0x1fb   : > { %1843 = vrot.lane.b32.xlu1 %v2866_v39, %s2687_s10 }
 0x1fe   : > { %1989 = vrot.lane.b32.xlu0 %v2866_v39, %s2688_s14 }
 0x1ff   : > { %1912 = vrot.lane.b32.xlu1 %v2866_v39, %s2689_s11 }
 0x202   : > { %1993 = vrot.lane.b32.xlu0 %v2868_v13, %s2688_s14 }
 0x203   : > { %1916 = vrot.lane.b32.xlu1 %v2868_v13, %s2689_s11 }
 0x206   : > { %1463 = vrot.lane.b32.xlu0 %v2902_v48, %s2682_s6 }
 0x207   : > { %1467 = vrot.lane.b32.xlu1 %v2904_v49, %s2682_s6 }
 0x20a   : > { %1914 = vrot.lane.b32.xlu0 %v2902_v48, %s2689_s11 }
 0x20b   : > { %1533 = vrot.lane.b32.xlu1 %v2902_v48, %s2683_s7 }
 0x20e   : > { %1918 = vrot.lane.b32.xlu0 %v2904_v49, %s2689_s11 }
 0x20f   : > { %1537 = vrot.lane.b32.xlu1 %v2904_v49, %s2683_s7 }
 0x211   : > { %v1227_v50 = vpop.f32.mrf.mxu1  ;;  %v1268_v51 = vpop.f32.mrf.mxu0 }
 0x212   : > { %v1287_v52 = vmul.f32 0.70710677, %v1227_v50  ;;  %v1289_v53 = vmul.f32 0.70710677, %v1268_v51  ;;  %v1279_v62 = vmul.f32 0.5, %v1227_v50  ;;  %v1281_v2 = vmul.f32 0.5, %v1268_v51 }
 0x213   : > { %v1229_v54 = vpop.f32.mrf.mxu1  ;;  %1610 = vrot.lane.b32.xlu1 %v2902_v48, %s2684_s8  ;;  %v1270_v55 = vpop.f32.mrf.mxu0  ;;  %v1318_v51 = vadd.s32 256, %v3042_v38 }
 0x214   : > { %2505 = verf.f32 %v1287_v52  ;;  %v1288_v5 = vmul.f32 0.70710677, %v1229_v54  ;;  %v1290_v6 = vmul.f32 0.70710677, %v1270_v55  ;;  %v1280_v15 = vmul.f32 0.5, %v1229_v54 }
 0x215   : > { %2507 = verf.f32 %v1289_v53  ;;  %v1231_v56 = vpop.f32.mrf.mxu1  ;;  %v1272_v57 = vpop.f32.mrf.mxu0  ;;  %v1282_v18 = vmul.f32 0.5, %v1270_v55  ;;  %v1342_v54 = vand.u32 31, %v1318_v51 }
 0x216   : > { %2509 = verf.f32 %v1288_v5 }
 0x217   : > { %v1232_v58 = vpop.f32.mrf.mxu1  ;;  %1614 = vrot.lane.b32.xlu1 %v2904_v49, %s2684_s8  ;;  %v1273_v59 = vpop.f32.mrf.mxu0  ;;  %2511 = verf.f32 %v1290_v6  ;;  %vm3080_vm6 = vcmp.ne.s32.totalorder %v1342_v54, 0  ;;  %vm3086_vm7 = vcmp.ne.s32.totalorder %v1342_v54, 31 }
 0x218   : > { %v1317_v59 = vadd.s32 128, %v3042_v38 }
 0x21b   : > { %1679 = vrot.lane.b32.xlu1 %v2902_v48, %s2685_s9 }
 0x21f   : > { %1683 = vrot.lane.b32.xlu1 %v2904_v49, %s2685_s9 }
 0x221   : > { %v2506_v60 = vpop.eup %2505 }
 0x222   : > { %v2508_v61 = vpop.eup %2507  ;;  %v1303_v63 = vadd.f32 1.0, %v2506_v60 }
 0x223   : > { %1768 = vrot.lane.b32.xlu1 %v2902_v48, %s2686_s24  ;;  %v1305_v1 = vadd.f32 1.0, %v2508_v61  ;;  %v2510_v9 = vpop.eup %2509 }
 0x224   : > { %v2928_v0 = vmul.f32 %v1303_v63, %v1279_v62  ;;  %v1304_v11 = vadd.f32 1.0, %v2510_v9  ;;  %v2512_v12 = vpop.eup %2511 }
 0x225   : > { %v2934_v3 = vmul.f32 %v1305_v1, %v1281_v2  ;;  %v1306_v17 = vadd.f32 1.0, %v2512_v12 }
 0x226   : > { %1469 = vrot.lane.b32.xlu0 %v2928_v0, %s2682_s6  ;;  %v2978_v16 = vmul.f32 %v1304_v11, %v1280_v15  ;;  %v1335_v15 = vand.u32 31, %v1317_v59 }
 0x227   : > { %1772 = vrot.lane.b32.xlu1 %v2904_v49, %s2686_s24  ;;  %v2986_v20 = vmul.f32 %v1306_v17, %v1282_v18 }
 0x228   : > { %vm3114_vm10 = vcmp.ne.s32.totalorder %v1335_v15, 0  ;;  %vm3126_vm11 = vcmp.ne.s32.totalorder %v1335_v15, 31 }
 0x229   : > { %3714 = vst [vmem:[#allocation11_spill] sm:$0xff] %v2986_v20 }
 0x22a   : > { %1473 = vrot.lane.b32.xlu0 %v2934_v3, %s2682_s6 }
 0x22b   : > { %1845 = vrot.lane.b32.xlu1 %v2902_v48, %s2687_s10 }
 0x22e   : > { %1539 = vrot.lane.b32.xlu0 %v2928_v0, %s2683_s7 }
 0x22f   : > { %1849 = vrot.lane.b32.xlu1 %v2904_v49, %s2687_s10 }
 0x232   : > { %1543 = vrot.lane.b32.xlu0 %v2934_v3, %s2683_s7 }
 0x233   : > { %1991 = vrot.lane.b32.xlu1 %v2902_v48, %s2688_s14 }
 0x236   : > { %1616 = vrot.lane.b32.xlu0 %v2928_v0, %s2684_s8 }
 0x237   : > { %1995 = vrot.lane.b32.xlu1 %v2904_v49, %s2688_s14 }
 0x23a   : > { %1620 = vrot.lane.b32.xlu0 %v2934_v3, %s2684_s8 }
 0x23b   : > { %1685 = vrot.lane.b32.xlu1 %v2928_v0, %s2685_s9 }
 0x23e   : > { %1774 = vrot.lane.b32.xlu0 %v2928_v0, %s2686_s24 }
 0x23f   : > { %1689 = vrot.lane.b32.xlu1 %v2934_v3, %s2685_s9 }
 0x242   : > { %1778 = vrot.lane.b32.xlu0 %v2934_v3, %s2686_s24 }
 0x243   : > { %1920 = vrot.lane.b32.xlu1 %v2928_v0, %s2689_s11 }
 0x246   : > { %1851 = vrot.lane.b32.xlu0 %v2928_v0, %s2687_s10 }
 0x247   : > { %1924 = vrot.lane.b32.xlu1 %v2934_v3, %s2689_s11 }
 0x24a   : > { %1855 = vrot.lane.b32.xlu0 %v2934_v3, %s2687_s10 }
 0x24b   : > { %1471 = vrot.lane.b32.xlu1 %v2978_v16, %s2682_s6 }
 0x24e   : > { %1687 = vrot.lane.b32.xlu0 %v2978_v16, %s2685_s9 }
 0x24f   : > { %1475 = vrot.lane.b32.xlu1 %v2986_v20, %s2682_s6  ;;  %s2583_s6 = scalar_lea.vmem %s2124_s30, 1024 }
 0x250   : > { %p2584_p1 = scmp.ne.s32.totalorder %s2124_s30, %s2583_s6 }
 0x252   : > { %1691 = vrot.lane.b32.xlu0 %v2986_v20, %s2685_s9  ;;  %p2585_p8 = pnand %p2584_p1, %p2803_p13 }
 0x253   : > { %1541 = vrot.lane.b32.xlu1 %v2978_v16, %s2683_s7 }
 0x254   : > { %p2586_p10 = pneg %p2585_p8 }
 0x256   : > { %1997 = vrot.lane.b32.xlu0 %v2928_v0, %s2688_s14 }
 0x257   : > { %1545 = vrot.lane.b32.xlu1 %v2986_v20, %s2683_s7  ;;  %s2587_s7 = sshll.u32 %s2690_s18, 4  ;;  %s2588_s7 = int_to_ptr.vmem [resolvable:$false] %s2587_s7 }
 0x258   : > { %v3006_v24 = vpop.permute.xlu0 %1461  ;;  %p2590_p0 = scmp.lt.s32.totalorder %s2124_s30, %s2588_s7 }
 0x259   : > { %v1466_v26 = vpop.permute.xlu1 %1465 }
 0x25a   : > { %1922 = vrot.lane.b32.xlu0 %v2978_v16, %s2689_s11 }
 0x25b   : > { %1618 = vrot.lane.b32.xlu1 %v2978_v16, %s2684_s8 }
 0x25c   : > { %v1536_v25 = vpop.permute.xlu0 %1535 }
 0x25d   : > { %v3012_v27 = vpop.permute.xlu1 %1531 }
 0x25e   : > { %2001 = vrot.lane.b32.xlu0 %v2934_v3, %s2688_s14 }
 0x25f   : > { %1622 = vrot.lane.b32.xlu1 %v2986_v20, %s2684_s8  ;;  %s2589_s8 = scalar_lea.vmem %s2588_s7, 2048 }
 0x260   : > { %v1613_v28 = vpop.permute.xlu0 %1612  ;;  %p2591_p2 = scmp.lt.s32.totalorder %s2589_s8, %s2583_s6 }
 0x261   : > { %v3018_v29 = vpop.permute.xlu1 %1608 }
 0x262   : > { %p2592_p3 = por %p2591_p2, %p2590_p0 }
 0x263   : > { %1776 = vrot.lane.b32.xlu1 %v2978_v16, %s2686_s24 }
 0x264   : > { %v3022_v30 = vpop.permute.xlu0 %1681  ;;  %p2593_p5 = pnand %p2592_p3, %p2586_p10 }
 0x265   : > { %v3024_v31 = vpop.permute.xlu1 %1677 }
 0x267   : > { %1780 = vrot.lane.b32.xlu1 %v2986_v20, %s2686_s24 }
 0x268   : > { %v3030_v33 = vpop.permute.xlu0 %1770 }
 0x269   : > { %v3028_v32 = vpop.permute.xlu1 %1766 }
 0x26b   : > { %1853 = vrot.lane.b32.xlu1 %v2978_v16, %s2687_s10 }
 0x26c   : > { %v3038_v36 = vpop.permute.xlu0 %1847 }
 0x26d   : > { %v3034_v34 = vpop.permute.xlu1 %1843 }
 0x26f   : > { %1857 = vrot.lane.b32.xlu1 %v2986_v20, %s2687_s10 }
 0x270   : > { %v3049_v42 = vpop.permute.xlu0 %1989 }
 0x271   : > { %v3040_v37 = vpop.permute.xlu1 %1912 }
 0x273   : > { %1926 = vrot.lane.b32.xlu1 %v2986_v20, %s2689_s11 }
 0x274   : > { %v3061_v46 = vpop.permute.xlu0 %1993 }
 0x275   : > { %v3046_v40 = vpop.permute.xlu1 %1916 }
 0x277   : > { %1999 = vrot.lane.b32.xlu1 %v2978_v16, %s2688_s14 }
 0x278   : > { %v1464_v56 = vpop.permute.xlu0 %1463 }
 0x279   : > { %v3054_v44 = vpop.permute.xlu1 %1467  ;;  %v1483_v63 = vsel %vm1477_vm2, %v1464_v56, %v1466_v26 }
 0x27a   : > { %v1482_v45 = vsel %vm1477_vm2, %v1466_v26, %v3054_v44  ;;  %v1504_v9 = vsel %vm3080_vm6, %v1483_v63, 0.0 }
 0x27b   : > { %2003 = vrot.lane.b32.xlu1 %v2986_v20, %s2688_s14  ;;  %v1505_v52 = vsel %vm3063_vm3, %v1482_v45, 0.0 }
 0x27c   : > { %v1518_v57 = vmul.f32 %v2944_v4, %v1505_v52  ;;  %v3118_v51 = vpop.permute.xlu0 %1914 }
 0x27d   : > { %v1534_v50 = vpop.permute.xlu1 %1533 }
 0x27e   : > { %v1553_v5 = vsel %vm1547_vm4, %v1534_v50, %v1536_v25 }
 0x27f   : > { %v1586_v17 = vmul.f32 %v2950_v7, %v1553_v5 }
 0x281   : > { %v3071_v53 = vpop.permute.xlu1 %1537 }
 0x282   : > { %v1552_v55 = vsel %vm1547_vm4, %v1536_v25, %v3071_v53  ;;  %v1517_v25 = vmul.f32 %v2944_v4, %v1504_v9  ;;  %v1752_v9 = vmul.f32 %v2966_v10, %v2868_v13  ;;  %v3158_v13 = vpop.permute.xlu0 %1918 }
 0x283   : > { %v1587_v58 = vmul.f32 %v2950_v7, %v1552_v55  ;;  %v1484_v55 = vsel %vm1477_vm2, %v3006_v24, %v1464_v56  ;;  %v1933_v62 = vsel %vm3694_vm15, %v3046_v40, %v3158_v13 }
 0x284   : > { %v1594_v52 = vadd.f32 %v1586_v17, %v1517_v25 }
 0x285   : > { %v1595_v60 = vadd.f32 %v1587_v58, %v1518_v57  ;;  %v1611_v61 = vpop.permute.xlu1 %1610 }
 0x286   : > { %v1630_v2 = vsel %vm3696_vm5, %v1611_v61, %v1613_v28  ;;  %v1631_v58 = vsel %vm3696_vm5, %v3018_v29, %v1611_v61  ;;  %v1503_v61 = vsel %vm3114_vm10, %v1484_v55, 0.0 }
 0x287   : > { %v1651_v11 = vsel %vm3086_vm7, %v1630_v2, 0.0 }
 0x288   : > { %v1663_v35 = vmul.f32 %v2960_v8, %v1651_v11  ;;  %v1650_v11 = vsel %vm3126_vm11, %v1631_v58, 0.0 }
 0x289   : > { %v3102_v12 = vpop.permute.xlu1 %1614 }
 0x28a   : > { %v1629_v18 = vsel %vm3696_vm5, %v1613_v28, %v3102_v12  ;;  %v1671_v63 = vadd.f32 %v1663_v35, %v1594_v52  ;;  %v1320_v35 = vadd.s32 512, %v3042_v38 }
 0x28b   : > { %v1652_v26 = vsel %vm3094_vm8, %v1629_v18, 0.0 }
 0x28c   : > { %v1664_v41 = vmul.f32 %v2960_v8, %v1652_v26 }
 0x28d   : > { %v1680_v43 = vpop.permute.xlu1 %1679 }
 0x28e   : > { %v1672_v28 = vadd.f32 %v1664_v41, %v1595_v60  ;;  %v1699_v54 = vsel %vm3698_vm9, %v1680_v43, %v3022_v30  ;;  %v1554_v60 = vsel %vm1547_vm4, %v3012_v27, %v1534_v50  ;;  %v1700_v56 = vsel %vm3698_vm9, %v3024_v31, %v1680_v43 }
 0x28f   : > { %v1720_v59 = vsel %vm3080_vm6, %v1699_v54, 0.0  ;;  %v1585_v17 = vmul.f32 %v2950_v7, %v1554_v60  ;;  %v1719_v26 = vsel %vm3114_vm10, %v1700_v56, 0.0  ;;  %v1516_v43 = vmul.f32 %v2944_v4, %v1503_v61 }
 0x290   : > { %v1732_v2 = vmul.f32 %v2988_v21, %v1720_v59  ;;  %v1731_v58 = vmul.f32 %v2988_v21, %v1719_v26  ;;  %v1356_v60 = vand.u32 31, %v1320_v35 }
 0x291   : > { %v3142_v5 = vpop.permute.xlu1 %1683  ;;  %v1593_v55 = vadd.f32 %v1585_v17, %v1516_v43 }
 0x292   : > { %v1740_v15 = vadd.f32 %v1732_v2, %v1671_v63  ;;  %v1698_v50 = vsel %vm3698_vm9, %v3022_v30, %v3142_v5  ;;  %v1662_v30 = vmul.f32 %v2960_v8, %v1650_v11  ;;  %vm3186_vm14 = vcmp.ne.s32.totalorder %v1356_v60, 0 }
 0x293   : > { %v1721_v18 = vsel %vm3063_vm3, %v1698_v50, 0.0  ;;  %v3727_v11 = vmov 0  ;;  %vm3248_vm1 = vcmp.ne.s32.totalorder %v1356_v60, 31 }
 0x294   : > { %v1733_v25 = vmul.f32 %v2988_v21, %v1721_v18  ;;  %v1760_v41 = vadd.f32 %v1752_v9, %v1740_v15  ;;  %v1670_v2 = vadd.f32 %v1662_v30, %v1593_v55  ;;  %v3728_v11 = vsel %vm3186_vm14, 4294967295, %v3727_v11 }
 0x295   : > { %v3166_v52 = vpop.permute.xlu1 %1768  ;;  %3729 = vst [vmem:[#allocation12_spill] sm:$0xff] %v3728_v11 }
 0x296   : > { %v3168_v54 = vadd.f32 %v1733_v25, %v1672_v28  ;;  %v1788_v59 = vsel %vm3697_vm12, %v3166_v52, %v3030_v33  ;;  %v1739_v61 = vadd.f32 %v1731_v58, %v1670_v2 }
 0x297   : > { %v1808_v28 = vsel %vm3126_vm11, %v1788_v59, 0.0 }
 0x298   : > { %v3175_v63 = vpop.permute.xlu0 %1469  ;;  %v1820_v17 = vmul.f32 %v3000_v23, %v1808_v28 }
 0x299   : > { %v1481_v56 = vsel %vm1477_vm2, %v3054_v44, %v3175_v63  ;;  %v3181_v9 = vpop.permute.xlu1 %1772  ;;  %v1751_v44 = vmul.f32 %v2966_v10, %v2902_v48 }
 0x29a   : > { %v1787_v15 = vsel %vm3697_vm12, %v3030_v33, %v3181_v9  ;;  %v1506_v35 = vsel %vm3186_vm14, %v1481_v56, 0.0 }
 0x29b   : > { %v1759_v25 = vadd.f32 %v1751_v44, %v1739_v61  ;;  %v1809_v33 = vsel %vm3086_vm7, %v1787_v15, 0.0  ;;  %v1519_v2 = vmul.f32 %v2944_v4, %v1506_v35  ;;  %v1934_v61 = vsel %vm3694_vm15, %v3118_v51, %v3046_v40 }
 0x29c   : > { %v3194_v50 = vpop.permute.xlu0 %1473  ;;  %v1821_v56 = vmul.f32 %v3000_v23, %v1809_v33  ;;  %v1967_v40 = vmul.f32 %v2984_v19, %v1933_v62 }
 0x29d   : > { %v3199_v18 = vpop.permute.xlu1 %1845  ;;  %v1828_v55 = vadd.f32 %v1820_v17, %v1759_v25 }
 0x29e   : > { %v1865_v26 = vsel %vm3695_vm13, %v3199_v18, %v3038_v36  ;;  %v1829_v35 = vadd.f32 %v1821_v56, %v1760_v41 }
 0x29f   : > { %v1885_v43 = vsel %vm3114_vm10, %v1865_v26, 0.0  ;;  %vm1420_vm10 = vcmp.ge.s32.totalorder %v3042_v38, 32 }
 0x2a0   : > { %v1897_v48 = vmul.f32 %v2974_v14, %v1885_v43  ;;  %v3213_v30 = vpop.permute.xlu0 %1539 }
 0x2a1   : > { %v1551_v58 = vsel %vm1547_vm4, %v3071_v53, %v3213_v30  ;;  %v1850_v59 = vpop.permute.xlu1 %1849 }
 0x2a2   : > { %v1588_v45 = vmul.f32 %v2950_v7, %v1551_v58  ;;  %v1864_v28 = vsel %vm3695_vm13, %v3038_v36, %v1850_v59  ;;  %v1905_v53 = vadd.f32 %v1897_v48, %v1828_v55  ;;  %v1966_v36 = vmul.f32 %v2984_v19, %v1934_v61 }
 0x2a3   : > { %v1886_v15 = vsel %vm3080_vm6, %v1864_v28, 0.0 }
 0x2a4   : > { %v1596_v44 = vadd.f32 %v1588_v45, %v1519_v2  ;;  %v1898_v17 = vmul.f32 %v2974_v14, %v1886_v15  ;;  %v3233_v26 = vpop.permute.xlu0 %1543  ;;  %v1974_v58 = vadd.f32 %v1966_v36, %v1905_v53 }
 0x2a5   : > { %v3235_v25 = vpop.permute.xlu1 %1991 }
 0x2a6   : > { %v2011_v33 = vsel %vm2005_vm0, %v3235_v25, %v3061_v46  ;;  %v1906_v55 = vadd.f32 %v1898_v17, %v1829_v35 }
 0x2a7   : > { %v2031_v43 = vsel %vm3126_vm11, %v2011_v33, 0.0 }
 0x2a8   : > { %v2043_v41 = vmul.f32 %v2996_v22, %v2031_v43  ;;  %v3253_v2 = vpop.permute.xlu0 %1616 }
 0x2a9   : > { %v1628_v56 = vsel %vm3696_vm5, %v3102_v12, %v3253_v2  ;;  %v3259_v45 = vpop.permute.xlu1 %1995  ;;  %v1975_v12 = vadd.f32 %v1967_v40, %v1906_v55 }
 0x2aa   : > { %v2051_v57 = vadd.f32 %v2043_v41, %v1974_v58  ;;  %v1653_v60 = vsel %vm3248_vm1, %v1628_v56, 0.0  ;;  %v2010_v28 = vsel %vm2005_vm0, %v3061_v46, %v3259_v45  ;;  %v1754_v56 = vmul.f32 %v2966_v10, %v2928_v0 }
 0x2ab   : > { %v1665_v61 = vmul.f32 %v2960_v8, %v1653_v60  ;;  %v2032_v15 = vsel %vm3086_vm7, %v2010_v28, 0.0 }
 0x2ac   : > { %v2067_v53 = vmul.f32 0.70710677, %v2051_v57  ;;  %v2044_v17 = vmul.f32 %v2996_v22, %v2032_v15  ;;  %v3272_v36 = vpop.permute.xlu0 %1620 }
 0x2ad   : > { %v1673_v35 = vadd.f32 %v1665_v61, %v1596_v44  ;;  %v1686_v33 = vpop.permute.xlu1 %1685 }
 0x2ae   : > { %2513 = verf.f32 %v2067_v53  ;;  %v2052_v62 = vadd.f32 %v2044_v17, %v1975_v12  ;;  %v1697_v46 = vsel %vm3698_vm9, %v3142_v5, %v1686_v33  ;;  %v1321_v17 = vadd.s32 640, %v3042_v38 }
 0x2af   : > { %v1722_v43 = vsel %vm3186_vm14, %v1697_v46, 0.0 }
 0x2b0   : > { %v2068_v1 = vmul.f32 0.70710677, %v2052_v62  ;;  %v1734_v58 = vmul.f32 %v2988_v21, %v1722_v43  ;;  %v3280_v55 = vpop.permute.xlu0 %1774  ;;  %v2060_v47 = vmul.f32 0.5, %v2052_v62 }
 0x2b1   : > { %v3282_v41 = vpop.permute.xlu1 %1689  ;;  %v1786_v28 = vsel %vm3697_vm12, %v3181_v9, %v3280_v55 }
 0x2b2   : > { %2515 = verf.f32 %v2068_v1  ;;  %v1742_v44 = vadd.f32 %v1734_v58, %v1673_v35  ;;  %v1810_v12 = vsel %vm3094_vm8, %v1786_v28, 0.0  ;;  %v2059_v35 = vmul.f32 0.5, %v2051_v57 }
 0x2b3   : > { %v1322_v1 = vadd.s32 768, %v3042_v38  ;;  %v3316_v28 = vadd.s32 896, %v3042_v38  ;;  %v1363_v57 = vand.u32 31, %v1321_v17 }
 0x2b4   : > { %v3286_v40 = vpop.permute.xlu0 %1778  ;;  %v3288_v60 = vadd.f32 %v1754_v56, %v1742_v44  ;;  %v1822_v56 = vmul.f32 %v3000_v23, %v1810_v12  ;;  %v1328_v12 = vand.u32 31, %v3042_v38 }
 0x2b5   : > { %v3290_v5 = vpop.permute.xlu1 %1920  ;;  %v1377_v17 = vand.u32 31, %v3316_v28  ;;  %vm3334_vm6 = vcmp.ne.s32.totalorder %v1363_v57, 0 }
 0x2b6   : > { %3732 = vst [vmem:[#allocation13_spill] sm:$0xff] %v3288_v60  ;;  %3733 = vst [vmem:[#allocation14_spill] sm:$0xff] %v3290_v5 }
 0x2b7   : > { %vm3355_vm11 = vcmp.ne.s32.totalorder %v1377_v17, 0 }
 0x2b8   : > { %v3296_v61 = vpop.permute.xlu0 %1851 }
 0x2b9   : > { %v3298_v15 = vpop.permute.xlu1 %1924  ;;  %v1863_v0 = vsel %vm3695_vm13, %v1850_v59, %v3296_v61  ;;  %v1753_v59 = vmul.f32 %v2966_v10, %v2904_v49  ;;  %v1370_v49 = vand.u32 31, %v1322_v1  ;;  %v3739_v1 = vmov 0 }
 0x2ba   : > { %3734 = vst [vmem:[#allocation15_spill] sm:$0xff] %v3298_v15  ;;  %v1887_v9 = vsel %vm3063_vm3, %v1863_v0, 0.0  ;;  %vm3329_vm3 = vcmp.ne.s32.totalorder %v1328_v12, 0  ;;  %vm3372_vm13 = vcmp.ne.s32.totalorder %v1363_v57, 31 }
 0x2bb   : > { %v2514_v53 = vpop.eup %2513  ;;  %vm3338_vm7 = vcmp.ne.s32.totalorder %v1370_v49, 0  ;;  %vm3376_vm5 = vcmp.ne.s32.totalorder %v1370_v49, 31 }
 0x2bc   : > { %v2083_v46 = vadd.f32 1.0, %v2514_v53  ;;  %v3307_v43 = vpop.permute.xlu0 %1855  ;;  %v1761_v53 = vadd.f32 %v1753_v59, %v3168_v54  ;;  %v3740_v1 = vsel %vm3338_vm7, 4294967295, %v3739_v1 }
 0x2bd   : > { %v1472_v58 = vpop.permute.xlu1 %1471  ;;  %3741 = vst [vmem:[#allocation16_spill] sm:$0xff] %v3740_v1 }
 0x2be   : > { %v2091_v44 = vmul.f32 %v2083_v46, %v2059_v35  ;;  %v1899_v35 = vmul.f32 %v2974_v14, %v1887_v9  ;;  %v1830_v11 = vadd.f32 %v1822_v56, %v1761_v53  ;;  %v1479_v59 = vsel %vm1477_vm2, %v1472_v58, %v3194_v50 }
 0x2bf   : > { %v2516_v20 = vpop.eup %2515 }
 0x2c0   : > { %2099 = vst [vmem:[%s3318_s21 + $0x8] sm:$0xff] %v2091_v44  ;;  %v2084_v0 = vadd.f32 1.0, %v2516_v20  ;;  %v1688_v46 = vpop.permute.xlu0 %1687  ;;  %v1932_v44 = vsel %vm3694_vm15, %v3158_v13, %v3290_v5  ;;  %v1907_v54 = vadd.f32 %v1899_v35, %v1830_v11  ;;  %v1480_v13 = vsel %vm1477_vm2, %v3175_v63, %v1472_v58 }
 0x2c1   : > { %v1476_v60 = vpop.permute.xlu1 %1475  ;;  %v1695_v56 = vsel %vm3698_vm9, %v1688_v46, %v3282_v41  ;;  %vm3359_vm15 = vcmp.ne.s32.totalorder %v1328_v12, 31  ;;  %v3367_v63 = vsel %vm3697_vm12, %v3028_v32, %v3166_v52  ;;  %v1508_v12 = vsel %vm3338_vm7, %v1479_v59, 0.0  ;;  %vm3388_vm12 = vmand %vm1420_vm10, %vm3329_vm3 }
 0x2c2   : > { %v2092_v15 = vmul.f32 %v2084_v0, %v2060_v47  ;;  %v1696_v47 = vsel %vm3698_vm9, %v1686_v33, %v1688_v46  ;;  %v1478_v58 = vsel %vm1477_vm2, %v3194_v50, %v1476_v60  ;;  %v1507_v46 = vsel %vm3334_vm6, %v1480_v13, 0.0  ;;  %v3780_v0 = vld [vmem:[#allocation11_spill] sm:$0xff] }
 0x2c3   : > { %v1485_v50 = vsel %vm1477_vm2, %v1476_v60, %v3006_v24  ;;  %vm3397_vm9 = vcmp.ne.s32.totalorder %v1377_v17, 31  ;;  %v1723_v59 = vsel %vm3334_vm6, %v1696_v47, 0.0  ;;  %v1724_v13 = vsel %vm3338_vm7, %v1695_v56, 0.0 }
 0x2c4   : > { %2100 = vst [vmem:[%s3318_s21 + $0x10] sm:$0xff] %v2092_v15  ;;  %v1692_v9 = vpop.permute.xlu0 %1691  ;;  %v1968_v15 = vmul.f32 %v2984_v19, %v1932_v44  ;;  %v1509_v17 = vsel %vm3355_vm11, %v1478_v58, 0.0  ;;  %v1520_v47 = vmul.f32 %v2944_v4, %v1507_v46  ;;  %v1521_v1 = vmul.f32 %v2944_v4, %v1508_v12 }
 0x2c5   : > { %v1542_v11 = vpop.permute.xlu1 %1541  ;;  %vm3755_vm2 = vcmp.lt.s32.totalorder %v3042_v38, 1 }
 0x2c6   : > { %v1976_v57 = vadd.f32 %v1968_v15, %v1907_v54  ;;  %v1549_v5 = vsel %vm1547_vm4, %v1542_v11, %v3233_v26  ;;  %v1550_v54 = vsel %vm1547_vm4, %v3213_v30, %v1542_v11  ;;  %v1736_v30 = vmul.f32 %v2988_v21, %v1724_v13 }
 0x2c7   : > { %v1590_v6 = vmul.f32 %v2950_v7, %v1549_v5  ;;  %v1589_v46 = vmul.f32 %v2950_v7, %v1550_v54  ;;  %v1694_v5 = vsel %vm3755_vm2, %v3282_v41, %v1692_v9 }
 0x2c8   : > { %v3395_v49 = vpop.permute.xlu0 %1997 }
 0x2c9   : > { %3752 = vst [vmem:[#allocation17_spill] sm:$0xff] %v3395_v49  ;;  %v2009_v24 = vsel %vm2005_vm0, %v3259_v45, %v3395_v49  ;;  %v1546_v60 = vpop.permute.xlu1 %1545  ;;  %v1502_v45 = vsel %vm3388_vm12, %v1485_v50, 0.0  ;;  %v1735_v49 = vmul.f32 %v2988_v21, %v1723_v59  ;;  %v1598_v41 = vadd.f32 %v1590_v6, %v1521_v1 }
 0x2ca   : > { %v2033_v15 = vsel %vm3094_vm8, %v2009_v24, 0.0  ;;  %v1555_v56 = vsel %vm1547_vm4, %v1546_v60, %v3012_v27  ;;  %v1548_v11 = vsel %vm1547_vm4, %v3233_v26, %v1546_v60  ;;  %v1522_v27 = vmul.f32 %v2944_v4, %v1509_v17  ;;  %vm3756_vm8 = vmmov %vm3755_vm2 }
 0x2cb   : > { %v2045_v58 = vmul.f32 %v2996_v22, %v2033_v15  ;;  %v1572_v52 = vsel %vm1420_vm10, %v1555_v56, 0.0  ;;  %v1515_v59 = vmul.f32 %v2944_v4, %v1502_v45  ;;  %v1701_v26 = vsel %vm3756_vm8, %v1692_v9, %v3024_v31  ;;  %vm3464_vm2 = vmand %vm1420_vm10, %vm3359_vm15 }
 0x2cc   : > { %vm3757_vm4 = vcmp.lt.s32.totalorder %v3042_v38, 31  ;;  %v1591_v24 = vmul.f32 %v2950_v7, %v1548_v11  ;;  %v1584_v17 = vmul.f32 %v2950_v7, %v1572_v52  ;;  %v1597_v15 = vadd.f32 %v1589_v46, %v1520_v47 }
 0x2cd   : > { %v3435_v12 = vadd.f32 %v2045_v58, %v1976_v57  ;;  %v1619_v50 = vpop.permute.xlu1 %1618  ;;  %vm3758_vm12 = vmmov %vm3757_vm4  ;;  %v1725_v56 = vsel %vm3355_vm11, %v1694_v5, 0.0 }
 0x2ce   : > { %v1626_v13 = vsel %vm3757_vm4, %v1619_v50, %v3272_v36  ;;  %v1627_v4 = vsel %vm3758_vm12, %v3253_v2, %v1619_v50  ;;  %v1718_v2 = vsel %vm3329_vm3, %v1701_v26, 0.0  ;;  %vm3761_vm8 = vmmov %vm3757_vm4  ;;  %v1599_v11 = vadd.f32 %v1591_v24, %v1522_v27 }
 0x2cf   : > { %v2069_v57 = vmul.f32 0.70710677, %v3435_v12  ;;  %v1655_v60 = vsel %vm3376_vm5, %v1626_v13, 0.0  ;;  %v1654_v31 = vsel %vm3372_vm13, %v1627_v4, 0.0  ;;  %vm3762_vm10 = vmmov %vm3757_vm4  ;;  %v1592_v50 = vadd.f32 %v1584_v17, %v1515_v59 }
 0x2d0   : > { %v1667_v9 = vmul.f32 %v2960_v8, %v1655_v60  ;;  %v1666_v7 = vmul.f32 %v2960_v8, %v1654_v31  ;;  %vm3763_vm4 = vcmp.lt.s32.totalorder %v3042_v38, 97  ;;  %v1730_v24 = vmul.f32 %v2988_v21, %v1718_v2 }
 0x2d1   : > { %2517 = verf.f32 %v2069_v57  ;;  %v1623_v1 = vpop.permute.xlu1 %1622  ;;  %v1756_v57 = vmul.f32 %v2966_v10, %v2934_v3  ;;  %v1737_v4 = vmul.f32 %v2988_v21, %v1725_v56  ;;  %v2012_v21 = vsel %vm2005_vm0, %v3049_v42, %v3235_v25 }
 0x2d2   : > { %v1675_v45 = vadd.f32 %v1667_v9, %v1598_v41  ;;  %v1625_v58 = vsel %vm3761_vm8, %v3272_v36, %v1623_v1  ;;  %v1632_v6 = vsel %vm3762_vm10, %v1623_v1, %v3018_v29  ;;  %v1674_v52 = vadd.f32 %v1666_v7, %v1597_v15  ;;  %vm3767_vm8 = vmmov %vm3763_vm4 }
 0x2d3   : > { %v1649_v47 = vsel %vm3464_vm2, %v1632_v6, 0.0  ;;  %v1656_v46 = vsel %vm3397_vm9, %v1625_v58, 0.0  ;;  %v1866_v36 = vsel %vm3763_vm4, %v3034_v34, %v3199_v18  ;;  %v1750_v18 = vmul.f32 %v2966_v10, %v2866_v39  ;;  %vm3768_vm10 = vmmov %vm3763_vm4 }
 0x2d4   : > { %v1744_v26 = vadd.f32 %v1736_v30, %v1675_v45  ;;  %v1661_v5 = vmul.f32 %v2960_v8, %v1649_v47  ;;  %v1668_v13 = vmul.f32 %v2960_v8, %v1656_v46  ;;  %v1743_v29 = vadd.f32 %v1735_v49, %v1674_v52 }
 0x2d5   : > { %v1777_v27 = vpop.permute.xlu1 %1776  ;;  %v1807_v8 = vsel %vm3359_vm15, %v3367_v63, 0.0  ;;  %v1884_v3 = vsel %vm3329_vm3, %v1866_v36, 0.0  ;;  %vm3764_vm12 = vcmp.lt.s32.totalorder %v3042_v38, 127  ;;  %vm3765_vm2 = vcmp.lt.s32.totalorder %v3042_v38, 96  ;;  %v1923_v36 = vpop.permute.xlu0 %1922 }
 0x2d6   : > { %v1669_v59 = vadd.f32 %v1661_v5, %v1592_v50  ;;  %v1676_v30 = vadd.f32 %v1668_v13, %v1599_v11  ;;  %v3496_v60 = vadd.f32 %v1756_v57, %v1744_v26  ;;  %v1819_v31 = vmul.f32 %v3000_v23, %v1807_v8  ;;  %vm3766_vm3 = vmmov %vm3764_vm12  ;;  %v3773_v8 = vld [vmem:[#allocation15_spill] sm:$0xff] }
 0x2d7   : > { %v1785_v63 = vsel %vm3764_vm12, %v3280_v55, %v1777_v27  ;;  %v1935_v39 = vsel %vm3765_vm2, %v3040_v37, %v3118_v51  ;;  %v1896_v20 = vmul.f32 %v2974_v14, %v1884_v3  ;;  %v1784_v2 = vsel %vm3766_vm3, %v1777_v27, %v3286_v40  ;;  %vm3771_vm12 = vmmov %vm3766_vm3 }
 0x2d8   : > { %v1738_v49 = vadd.f32 %v1730_v24, %v1669_v59  ;;  %v1745_v41 = vadd.f32 %v1737_v4, %v1676_v30  ;;  %v2030_v25 = vsel %vm3359_vm15, %v2012_v21, 0.0  ;;  %v1811_v15 = vsel %vm3248_vm1, %v1785_v63, 0.0  ;;  %vm3769_vm15 = vmmov %vm3766_vm3 }
 0x2d9   : > { %v1781_v17 = vpop.permute.xlu1 %1780  ;;  %v1965_v1 = vmul.f32 %v2984_v19, %v1935_v39  ;;  %v2061_v58 = vmul.f32 0.5, %v3435_v12  ;;  %v1812_v6 = vsel %vm3372_vm13, %v1784_v2, 0.0  ;;  %v2042_v11 = vmul.f32 %v2996_v22, %v2030_v25 }
 0x2da   : > { %v1758_v9 = vadd.f32 %v1750_v18, %v1738_v49  ;;  %v1755_v47 = vmul.f32 %v2966_v10, %v2978_v16  ;;  %v1823_v46 = vmul.f32 %v3000_v23, %v1811_v15  ;;  %v1824_v57 = vmul.f32 %v3000_v23, %v1812_v6  ;;  %v3775_v18 = vld [vmem:[#allocation14_spill] sm:$0xff]  ;;  %v3776_v49 = vld [vmem:[#allocation13_spill] sm:$0xff] }
 0x2db   : > { %vm1435_vm4 = vcmp.lt.s32.totalorder %v3316_v28, 992  ;;  %v3783_v6 = vld [vmem:[#allocation17_spill] sm:$0xff] }
 0x2dc   : > { %v1827_v54 = vadd.f32 %v1819_v31, %v1758_v9  ;;  %v1763_v16 = vadd.f32 %v1755_v47, %v1743_v29  ;;  %v1831_v3 = vadd.f32 %v1823_v46, %v3776_v49  ;;  %vm3570_vm3 = vmand %vm1435_vm4, %vm3355_vm11 }
 0x2dd   : > { %v1854_v7 = vpop.permute.xlu1 %1853  ;;  %vm3781_vm11 = vmmov %vm3765_vm2 }
 0x2de   : > { %v2518_v55 = vpop.eup %2517  ;;  %v1904_v56 = vadd.f32 %v1896_v20, %v1827_v54  ;;  %v1861_v51 = vsel %vm3767_vm8, %v1854_v7, %v3307_v43  ;;  %v1862_v45 = vsel %vm3768_vm10, %v3296_v61, %v1854_v7  ;;  %v1783_v61 = vsel %vm3769_vm15, %v3286_v40, %v1781_v17  ;;  %vm3615_vm10 = vmand %vm1435_vm4, %vm3397_vm9 }
 0x2df   : > { %v2085_v53 = vadd.f32 1.0, %v2518_v55  ;;  %v1888_v12 = vsel %vm3186_vm14, %v1862_v45, 0.0  ;;  %v1889_v5 = vsel %vm3334_vm6, %v1861_v51, 0.0  ;;  %v1790_v40 = vsel %vm3771_vm12, %v1781_v17, %v3028_v32  ;;  %vm3772_vm14 = vmmov %vm3767_vm8 }
 0x2e0   : > { %v1973_v52 = vadd.f32 %v1965_v1, %v1904_v56  ;;  %v1813_v4 = vsel %vm3376_vm5, %v1783_v61, 0.0  ;;  %v1900_v59 = vmul.f32 %v2974_v14, %v1888_v12  ;;  %v1901_v30 = vmul.f32 %v2974_v14, %v1889_v5  ;;  %vm3774_vm6 = vmmov %vm3765_vm2  ;;  %v2002_v1 = vpop.permute.xlu0 %2001 }
 0x2e1   : > { %v2093_v50 = vmul.f32 %v2085_v53, %v2061_v58  ;;  %v1858_v13 = vpop.permute.xlu1 %1857  ;;  %v1930_v29 = vsel %vm3774_vm6, %v1923_v36, %v3773_v8  ;;  %v1931_v32 = vsel %vm3765_vm2, %v3775_v18, %v1923_v36  ;;  %v1832_v21 = vadd.f32 %v1824_v57, %v1763_v16 }
 0x2e2   : > { %v3543_v27 = vadd.f32 %v2042_v11, %v1973_v52  ;;  %v1860_v24 = vsel %vm3772_vm14, %v3307_v43, %v1858_v13  ;;  %v1867_v17 = vsel %vm3767_vm8, %v1858_v13, %v3034_v34  ;;  %v1814_v9 = vsel %vm3397_vm9, %v1790_v40, 0.0 }
 0x2e3   : > { %2101 = vst [vmem:[%s3318_s21 + $0x18] sm:$0xff] %v2093_v50  ;;  %v1890_v39 = vsel %vm3338_vm7, %v1860_v24, 0.0  ;;  %v1757_v20 = vmul.f32 %v2966_v10, %v3780_v0  ;;  %v1825_v54 = vmul.f32 %v3000_v23, %v1813_v4  ;;  %v1969_v34 = vmul.f32 %v2984_v19, %v1931_v32  ;;  %vm3782_vm7 = vmmov %vm3765_vm2 }
 0x2e4   : > { %v2066_v62 = vmul.f32 0.70710677, %v3543_v27  ;;  %v1908_v25 = vadd.f32 %v1900_v59, %v1831_v3  ;;  %v1909_v15 = vadd.f32 %v1901_v30, %v1832_v21  ;;  %v1891_v7 = vsel %vm3570_vm3, %v1867_v17, 0.0 }
 0x2e5   : > { %v1927_v31 = vpop.permute.xlu1 %1926  ;;  %v1970_v55 = vmul.f32 %v2984_v19, %v1930_v29  ;;  %v1765_v56 = vadd.f32 %v1757_v20, %v1745_v41  ;;  %v1826_v51 = vmul.f32 %v3000_v23, %v1814_v9  ;;  %v1902_v10 = vmul.f32 %v2974_v14, %v1890_v39 }
 0x2e6   : > { %2519 = verf.f32 %v2066_v62  ;;  %v1936_v2 = vsel %vm3781_vm11, %v1927_v31, %v3040_v37  ;;  %v1929_v37 = vsel %vm3782_vm7, %v3773_v8, %v1927_v31  ;;  %v1833_v41 = vadd.f32 %v1825_v54, %v3496_v60 }
 0x2e7   : > { %v1960_v58 = vsel %vm1435_vm4, %v1936_v2, 0.0  ;;  %v1903_v23 = vmul.f32 %v2974_v14, %v1891_v7  ;;  %v1977_v46 = vadd.f32 %v1969_v34, %v1908_v25  ;;  %v1978_v50 = vadd.f32 %v1970_v55, %v1909_v15 }
 0x2e8   : > { %v1834_v14 = vadd.f32 %v1826_v51, %v1765_v56  ;;  %v1910_v48 = vadd.f32 %v1902_v10, %v1833_v41  ;;  %v1971_v12 = vmul.f32 %v2984_v19, %v1929_v37  ;;  %v1972_v33 = vmul.f32 %v2984_v19, %v1960_v58 }
 0x2e9   : > { %v2000_v45 = vpop.permute.xlu1 %1999  ;;  %v2058_v35 = vmul.f32 0.5, %v3543_v27 }
 0x2ea   : > { %v2007_v53 = vsel %vm2005_vm0, %v2000_v45, %v2002_v1  ;;  %v2008_v11 = vsel %vm2005_vm0, %v3783_v6, %v2000_v45  ;;  %v1911_v44 = vadd.f32 %v1903_v23, %v1834_v14  ;;  %v1979_v19 = vadd.f32 %v1971_v12, %v1910_v48 }
 0x2eb   : > { %v2034_v52 = vsel %vm3248_vm1, %v2008_v11, 0.0  ;;  %v2035_v47 = vsel %vm3372_vm13, %v2007_v53, 0.0 }
 0x2ec   : > { %v2046_v61 = vmul.f32 %v2996_v22, %v2034_v52  ;;  %v2047_v26 = vmul.f32 %v2996_v22, %v2035_v47  ;;  %v1980_v4 = vadd.f32 %v1972_v33, %v1911_v44 }
 0x2ed   : > { %v2004_v5 = vpop.permute.xlu1 %2003 }
 0x2ee   : > { %v2054_v13 = vadd.f32 %v2046_v61, %v1977_v46  ;;  %v2055_v36 = vadd.f32 %v2047_v26, %v1978_v50  ;;  %v2006_v57 = vsel %vm2005_vm0, %v2002_v1, %v2004_v5  ;;  %v2013_v28 = vsel %vm2005_vm0, %v2004_v5, %v3049_v42 }
 0x2ef   : > { %v2036_v16 = vsel %vm3376_vm5, %v2006_v57, 0.0  ;;  %v2037_v40 = vsel %vm3615_vm10, %v2013_v28, 0.0 }
 0x2f0   : > { %v2070_v24 = vmul.f32 0.70710677, %v2054_v13  ;;  %v2071_v62 = vmul.f32 0.70710677, %v2055_v36  ;;  %v2048_v59 = vmul.f32 %v2996_v22, %v2036_v16  ;;  %v2049_v30 = vmul.f32 %v2996_v22, %v2037_v40 }
 0x2f1   : > { %v2062_v43 = vmul.f32 0.5, %v2054_v13  ;;  %v2063_v31 = vmul.f32 0.5, %v2055_v36 }
 0x2f2   : > { %2521 = verf.f32 %v2070_v24  ;;  %v2056_v38 = vadd.f32 %v2048_v59, %v1979_v19  ;;  %v2057_v42 = vadd.f32 %v2049_v30, %v1980_v4 }
 0x2f3   : > { %v2520_v8 = vpop.eup %2519  ;;  %2523 = verf.f32 %v2071_v62 }
 0x2f4   : > { %v2082_v29 = vadd.f32 1.0, %v2520_v8  ;;  %v2072_v18 = vmul.f32 0.70710677, %v2056_v38  ;;  %v2073_v32 = vmul.f32 0.70710677, %v2057_v42  ;;  %v2064_v0 = vmul.f32 0.5, %v2056_v38 }
 0x2f5   : > { %v2065_v54 = vmul.f32 0.5, %v2057_v42 }
 0x2f6   : > { %v2090_v49 = vmul.f32 %v2082_v29, %v2058_v35  ;;  %2525 = verf.f32 %v2072_v18 }
 0x2f7   : > { %2527 = verf.f32 %v2073_v32 }
 0x2f8   : > { %2098 = vst [vmem:[%s3318_s21] sm:$0xff] %v2090_v49 }
 0x2ff   : > { %v2522_v3 = vpop.eup %2521 }
 0x300   : > { %v2524_v22 = vpop.eup %2523  ;;  %v2086_v17 = vadd.f32 1.0, %v2522_v3 }
 0x301   : > { %v2087_v21 = vadd.f32 1.0, %v2524_v22 }
 0x302   : > { %v2094_v9 = vmul.f32 %v2086_v17, %v2062_v43 }
 0x303   : > { %v2095_v27 = vmul.f32 %v2087_v21, %v2063_v31  ;;  %v2526_v63 = vpop.eup %2525 }
 0x304   : > { %2102 = vst [vmem:[%s3318_s21 + $0x20] sm:$0xff] %v2094_v9  ;;  %v2528_v39 = vpop.eup %2527  ;;  %v2088_v20 = vadd.f32 1.0, %v2526_v63 }
 0x305   : > { %2103 = vst [vmem:[%s3318_s21 + $0x28] sm:$0xff] %v2095_v27  ;;  %v2089_v2 = vadd.f32 1.0, %v2528_v39 }
 0x306   : > { %v2096_v34 = vmul.f32 %v2088_v20, %v2064_v0 }
 0x307   : > { %v2097_v25 = vmul.f32 %v2089_v2, %v2065_v54 }
 0x308   : > { %2104 = vst [vmem:[%s3318_s21 + $0x30] sm:$0xff] %v2096_v34 }
 0x309   : > { %2105 = vst [vmem:[%s3318_s21 + $0x38] sm:$0xff] %v2097_v25 }
 0x30a   : > { %2596 = shalt.err (!%p2593_p5)
}
 0x30b   : > { %s2597_s9 = scalar_lea.hbm %s3641_s25, 1024  ;;  %s2601_s10 = scalar_lea.hbm %s3689_s4, 2048 }
 0x30c   : > { %p2598_p7 = scmp.ne.s32.totalorder %s3641_s25, %s2597_s9  ;;  %p2602_p9 = scmp.lt.s32.totalorder %s3641_s25, %s3689_s4 }
 0x30d   : > { %p2603_p11 = scmp.lt.s32.totalorder %s2601_s10, %s2597_s9 }
 0x30e   : > { %p2599_p6 = pnand %p2598_p7, %p2803_p13 }
 0x30f   : > { %p2604_p12 = por %p2603_p11, %p2602_p9 }
 0x310   : > { %p2600_p4 = pneg %p2599_p6 }
 0x312   : > { %p2605_p1 = pnand %p2604_p12, %p2600_p4 }
 0x314   : > { %2608 = shalt.err (!%p2605_p1)
}
 0x315   : > { %2402 = dma.vmem_to_hbm [thread:$0]  (%p2803_p13), %s2124_s30, 1024, %s3641_s25, %s2107_s27  }
 0x316 PF: > { %s2135_s29 = sand.u32 1, %s2647_s15   ;;  %p3786_p8 = scmp.ne.s32.totalorder %s3706_s26, 0 }
 0x317   : > { %p3787_p10 = scmp.ge.s32.totalorder %s2667_s20, 2  ;;  %s2136_s21 = scalar_lea.sflag [#allocation4], %s2135_s29 }
 0x319   : > { %p2413_p0 = pnand %p3787_p10, %p3786_p8 }
 0x31b   : > { %p2414_p2 = pneg %p2413_p0 }
 0x31d   : > { %2642 = dma.done.wait (%p2414_p2), %s2136_s21, 1024  }
 0x31e   : > { %2644 = vsyncadd (%p2414_p2), %s2136_s21, 4294966272  ;;  %s21_s20 = sadd.s32 1, %s2667_s20   ;;  %s3788_s15 = smov %s2651_s16 }
 0x31f   : > { %p18_p3 = scmp.ge.s32.totalorder %s21_s20, 4   ;;  %s3789_s16 = smov %s2655_s17 }
 0x320   : > { %s3790_s17 = smov %s2812_s28  ;;  %s3791_s18 = smov %s2663_s19 }
 0x321   : > { %s3792_s19 = smov %s3794_s5  ;;  %20 = sbr.rel (!%p18_p3) target bundleno = 9 (0x9), region = 91 }
 0x326   :  { %2141 = vsyncpa [#allocation3], 1 }
 0x327   :  { %2143 = vsyncpa [#allocation3 + $0x1], 1 }
 0x328   :  { %2144 = vsyncpa [#allocation6], 1 }
 0x329   :  { %2145 = vsyncpa [#allocation4], 1 }
 0x32a   :  { %2147 = vsyncpa [#allocation4 + $0x1], 1 }

</bundles_post_ra>
